<compile_context>
chip_gen: v7x
topology: tpu7x:2x2x1
jax: 0.10.0
libtpu: 0.0.40
codegen_flags: <defaults>
</compile_context>

<pallas_src>
import functools

import jax
import jax.numpy as jnp
from jax import lax
from jax.experimental import pallas as pl
from jax.experimental.pallas import tpu as pltpu  # noqa: F401  (kept for TPU-specific tuning hooks)


# ----------------------------- Pallas kernels -------------------------------

def _gat_fused_kernel(x_ref, w_ref, asrc_ref, adst_ref, adj_ref, bias_ref, o_ref,
                      *, n_heads, out_ch):
    # x_ref:    (N, Fin)  bf16      w_ref:   (Fin, H*C) bf16
    # asrc_ref: (H, H*C)  f32  (row h holds att_src[h] in cols h*C:(h+1)*C, zeros elsewhere)
    # adst_ref: (H*C, H)  f32  (col h holds att_dst[h] in rows h*C:(h+1)*C, zeros elsewhere)
    # adj_ref:  (N, N)    int8 with adj[dst, src] = 1 for every edge src->dst (no self loops)
    # bias_ref: (1, H*C)  f32       o_ref:   (N, H*C)   f32
    n = adj_ref.shape[0]
    xw = jnp.dot(x_ref[...], w_ref[...], preferred_element_type=jnp.float32)      # (N, H*C)
    # Per-head attention coefficients, produced directly in broadcast-friendly layouts:
    #   a_src_rows[h, src] lane-major;  a_dst_cols[dst, h] sublane-major.
    a_src_rows = lax.dot_general(asrc_ref[...], xw, (((1,), (1,)), ((), ())),
                                 preferred_element_type=jnp.float32)              # (H, N)
    a_dst_cols = jnp.dot(xw, adst_ref[...], preferred_element_type=jnp.float32)   # (N, H)
    row = lax.broadcasted_iota(jnp.int32, (n, n), 0)
    col = lax.broadcasted_iota(jnp.int32, (n, n), 1)
    mask = (adj_ref[...].astype(jnp.float32) > 0.5) | (row == col)  # add_self_loops
    xw_b = xw.astype(jnp.bfloat16)
    bias = bias_ref[...]
    for h in range(n_heads):                                  # static unroll, heads share VMEM
        logits = a_dst_cols[:, h:h + 1] + a_src_rows[h:h + 1, :]        # (N_dst, N_src)
        logits = jnp.where(logits > 0, logits, 0.2 * logits)            # LeakyReLU(0.2)
        logits = jnp.where(mask, logits, -1e30)
        m = jnp.max(logits, axis=-1, keepdims=True)
        p = jnp.exp(logits - m)
        attn = p * pl.reciprocal(jnp.sum(p, axis=-1, keepdims=True), approx=True)
        agg = jnp.dot(attn.astype(jnp.bfloat16), xw_b[:, h * out_ch:(h + 1) * out_ch],
                      preferred_element_type=jnp.float32)               # (N, C)
        o_ref[:, h * out_ch:(h + 1) * out_ch] = agg + bias[:, h * out_ch:(h + 1) * out_ch]


def _sag_readout_kernel(x_ref, adj_ref, wrel_t_ref, wroot_t_ref, brel_ref, onehot_ref, o_ref):
    # x_ref: (N, HC) f32; adj_ref: (N, N) int8 (adj[i, j] = 1 for edge j->i)
    # wrel_t_ref/wroot_t_ref: (1, HC) f32; brel_ref: (1, 1) f32; onehot_ref: (B, N) f32
    # o_ref: (B, HC) f32
    x = x_ref[...]
    adj = adj_ref[...].astype(jnp.float32)
    onehot = onehot_ref[...]
    neigh = jnp.dot(adj, x, preferred_element_type=jnp.float32)                   # (N, HC)
    # GraphConv score, produced lane-major so it lines up with onehot's node axis.
    # (b_rel cancels under the per-graph softmax; kept for semantic fidelity.)
    score = (lax.dot_general(wrel_t_ref[...], neigh, (((1,), (1,)), ((), ())),
                             preferred_element_type=jnp.float32)
             + lax.dot_general(wroot_t_ref[...], x, (((1,), (1,)), ((), ())),
                               preferred_element_type=jnp.float32)
             + brel_ref[...])                                                     # (1, N)
    # per-graph softmax (PyG softmax(score, batch)) via one-hot bookkeeping, no gathers
    masked = score + (onehot - 1.0) * 1e30                                        # (B, N)
    smax = jnp.max(masked, axis=-1, keepdims=True)                                # (B, 1)
    smax_node = jnp.sum(onehot * smax, axis=0, keepdims=True)                     # (1, N)
    e = jnp.exp(score - smax_node)                                                # (1, N)
    denom = jnp.sum(onehot * e, axis=-1, keepdims=True)                           # (B, 1)
    denom_node = jnp.sum(onehot * denom, axis=0, keepdims=True)                   # (1, N)
    att = e / denom_node                                                          # (1, N)
    # global_add_pool(x * att, batch) == (onehot * att) @ x   -> single lane-dense store
    o_ref[...] = jnp.dot(onehot * att, x, preferred_element_type=jnp.float32)     # (B, HC)


def _coattn_rescal_kernel(h_ref, t_ref, r_ref, wk_ref, wq_ref, cob_ref, coa_ref, o_ref,
                          *, batch, nb):
    # h_ref/t_ref: (B, nb, d) f32;  r_ref: (B, d, d) f32 (pre-normalised relation matrices)
    # wk_ref/wq_ref: (d, d2) f32;   cob_ref/coa_ref: (1, d2) f32;   o_ref: (1, B) f32
    wk = wk_ref[...]
    wq = wq_ref[...]
    cob = cob_ref[...]
    coa = coa_ref[...]
    lane = lax.broadcasted_iota(jnp.int32, (1, batch), 1)
    out = jnp.zeros((1, batch), jnp.float32)
    for b in range(batch):                                     # static unroll (B tiny)
        h = h_ref[b]                                           # (nb, d)
        t = t_ref[b]
        r = r_ref[b]
        # CoAttention projections: keys from heads (receiver), queries from tails (attendant)
        keys = jnp.dot(h, wk, preferred_element_type=jnp.float32)        # (nb, d2)
        qrs = jnp.dot(t, wq, preferred_element_type=jnp.float32)         # (nb, d2)
        # RESCAL bilinear score  s = normalize(h) @ R @ normalize(t)^T   (bf16 MXU operands)
        hn = h * lax.rsqrt(jnp.maximum(jnp.sum(h * h, -1, keepdims=True), 1e-24))
        tn = t * lax.rsqrt(jnp.maximum(jnp.sum(t * t, -1, keepdims=True), 1e-24))
        hr = jnp.dot(hn.astype(jnp.bfloat16), r.astype(jnp.bfloat16),
                     preferred_element_type=jnp.float32)                 # (nb, d)
        s = lax.dot_general(hr.astype(jnp.bfloat16), tn.astype(jnp.bfloat16),
                            (((1,), (1,)), ((), ())),
                            preferred_element_type=jnp.float32)          # (nb, nb)
        total = jnp.zeros((1, 1), jnp.float32)
        for i in range(nb):                                    # static unroll (nb tiny)
            e_i = jnp.tanh(keys[i:i + 1, :] + qrs + cob)                 # (nb, d2)
            attn_row = lax.dot_general(coa, e_i, (((1,), (1,)), ((), ())),
                                       preferred_element_type=jnp.float32)   # (1, nb)
            total = total + jnp.sum(attn_row * s[i:i + 1, :], axis=-1, keepdims=True)
        out = out + jnp.where(lane == b, total, 0.0)           # place the scalar in lane b
    o_ref[...] = out                                           # single (1, B) store


# ------------------------------- layer wrappers ------------------------------

def one_hot_batch(batch, num_graphs):
    return (batch[None, :] == jnp.arange(num_graphs)[:, None]).astype(jnp.float32)


def build_adjacency(edge_index, num_nodes):
    # adj[dst, src] = 1 for every edge src -> dst (no self loops), stored as int8.
    # NOTE: repeated edges are de-duplicated (PyG counts multiplicities); inputs here have none.
    src, dst = edge_index
    return jnp.zeros((num_nodes, num_nodes), jnp.int8).at[dst, src].set(1)


def graph_layer_norm(x, batch, num_graphs, weight, bias, eps=1e-5):
    # PyG LayerNorm(mode='graph'): normalise over all nodes & channels of each graph.
    # Tiny per-graph statistics -> plain XLA segment ops beat extra kernel launches here.
    feat = x.shape[-1]
    node_ones = jnp.ones((x.shape[0],), jnp.float32)
    count = jnp.maximum(jax.ops.segment_sum(node_ones, batch, num_segments=num_graphs), 1.0) * feat
    mean = jax.ops.segment_sum(x.sum(-1), batch, num_segments=num_graphs) / count
    xc = x - mean[batch][:, None]
    var = jax.ops.segment_sum((xc * xc).sum(-1), batch, num_segments=num_graphs) / count
    out = xc * lax.rsqrt(var + eps)[batch][:, None]
    return out * weight + bias


def gat_conv(x, adj_i8, p, n_heads, out_ch):
    """Fused GATConv(in, out_ch, heads=n_heads), concat=True, add_self_loops, LeakyReLU(0.2)."""
    n, f_in = x.shape
    hc = n_heads * out_ch
    eye_h = jnp.eye(n_heads, dtype=jnp.float32)
    # Block matrices so a_src / a_dst come out of a single MXU matmul each, already in the
    # layout needed for broadcasting (src along lanes, dst along sublanes).
    asrc_mat = (eye_h[:, :, None] * p["att_src"][:, None, :]).reshape(n_heads, hc)    # (H, HC)
    adst_mat = (eye_h[:, :, None] * p["att_dst"][:, None, :]).reshape(n_heads, hc).T  # (HC, H)
    kernel = functools.partial(_gat_fused_kernel, n_heads=n_heads, out_ch=out_ch)
    return pl.pallas_call(
        kernel,
        grid=(1,),
        out_shape=jax.ShapeDtypeStruct((n, hc), jnp.float32),
        in_specs=[pl.BlockSpec((n, f_in), lambda i: (0, 0)),
                  pl.BlockSpec((f_in, hc), lambda i: (0, 0)),
                  pl.BlockSpec((n_heads, hc), lambda i: (0, 0)),
                  pl.BlockSpec((hc, n_heads), lambda i: (0, 0)),
                  pl.BlockSpec((n, n), lambda i: (0, 0)),
                  pl.BlockSpec((1, hc), lambda i: (0, 0))],
        out_specs=pl.BlockSpec((n, hc), lambda i: (0, 0)),
    )(x.astype(jnp.bfloat16), p["w"].astype(jnp.bfloat16),
      asrc_mat, adst_mat, adj_i8, p["bias"][None, :])


def sag_readout(x, adj_i8, onehot, p):
    """Fused SAGPooling(min_score=-1) (keeps all nodes) + global_add_pool -> (B, HC)."""
    n, hc = x.shape
    b = onehot.shape[0]
    return pl.pallas_call(
        _sag_readout_kernel,
        grid=(1,),
        out_shape=jax.ShapeDtypeStruct((b, hc), jnp.float32),
        in_specs=[pl.BlockSpec((n, hc), lambda i: (0, 0)),
                  pl.BlockSpec((n, n), lambda i: (0, 0)),
                  pl.BlockSpec((1, hc), lambda i: (0, 0)),
                  pl.BlockSpec((1, hc), lambda i: (0, 0)),
                  pl.BlockSpec((1, 1), lambda i: (0, 0)),
                  pl.BlockSpec((b, n), lambda i: (0, 0))],
        out_specs=pl.BlockSpec((b, hc), lambda i: (0, 0)),
    )(x, adj_i8, p["w_rel"].T, p["w_root"].T, p["b_rel"].reshape(1, 1), onehot)


def coattn_rescal(repr_h, repr_t, rel_mat, co):
    """Fused CoAttentionLayer + RESCAL scoring; full reduction in-kernel -> (B,)."""
    b, nb, d = repr_h.shape
    d2 = co["w_k"].shape[1]
    kernel = functools.partial(_coattn_rescal_kernel, batch=b, nb=nb)
    out = pl.pallas_call(
        kernel,
        grid=(1,),
        out_shape=jax.ShapeDtypeStruct((1, b), jnp.float32),
        in_specs=[pl.BlockSpec((b, nb, d), lambda i: (0, 0, 0)),
                  pl.BlockSpec((b, nb, d), lambda i: (0, 0, 0)),
                  pl.BlockSpec((b, d, d), lambda i: (0, 0, 0)),
                  pl.BlockSpec((d, d2), lambda i: (0, 0)),
                  pl.BlockSpec((d, d2), lambda i: (0, 0)),
                  pl.BlockSpec((1, d2), lambda i: (0, 0)),
                  pl.BlockSpec((1, d2), lambda i: (0, 0))],
        out_specs=pl.BlockSpec((1, b), lambda i: (0, 0)),
    )(repr_h, repr_t, rel_mat, co["w_k"], co["w_q"], co["bias"][None, :], co["a"][None, :])
    return out[0]


def ssi_ddi_forward(params, h_x, h_edge, h_batch, t_x, t_edge, t_batch, rels, num_graphs,
                    heads_out_feat_params, blocks_params):
    # Adjacency / pooling bookkeeping built once and reused by every block.
    adj_h = build_adjacency(h_edge, h_x.shape[0])
    adj_t = build_adjacency(t_edge, t_x.shape[0])
    oh_h = one_hot_batch(h_batch, num_graphs)
    oh_t = one_hot_batch(t_batch, num_graphs)

    ln0 = params["initial_norm"]
    h_x = graph_layer_norm(h_x, h_batch, num_graphs, ln0["w"], ln0["b"])
    t_x = graph_layer_norm(t_x, t_batch, num_graphs, ln0["w"], ln0["b"])

    repr_h, repr_t = [], []
    for i, (out_ch, n_heads) in enumerate(zip(heads_out_feat_params, blocks_params)):
        bp = params["blocks"][i]
        h_x = gat_conv(h_x, adj_h, bp["gat"], n_heads, out_ch)
        t_x = gat_conv(t_x, adj_t, bp["gat"], n_heads, out_ch)
        repr_h.append(sag_readout(h_x, adj_h, oh_h, bp["sag"]))
        repr_t.append(sag_readout(t_x, adj_t, oh_t, bp["sag"]))
        nn_p = params["net_norms"][i]
        h_x = jax.nn.elu(graph_layer_norm(h_x, h_batch, num_graphs, nn_p["w"], nn_p["b"]))
        t_x = jax.nn.elu(graph_layer_norm(t_x, t_batch, num_graphs, nn_p["w"], nn_p["b"]))

    repr_h = jnp.stack(repr_h, axis=-2)                          # (B, n_blocks, kge_dim)
    repr_t = jnp.stack(repr_t, axis=-2)
    b, nb, d = repr_h.shape

    # RESCAL relation embedding, normalised over its flattened dim (F.normalize).
    rel_vec = params["rescal"]["rel_emb"][rels]                  # (B, d*d)
    rel_vec = rel_vec / jnp.maximum(jnp.linalg.norm(rel_vec, axis=-1, keepdims=True), 1e-12)
    rel_mat = rel_vec.reshape(b, d, d)

    return coattn_rescal(repr_h, repr_t, rel_mat, params["co"])  # scores, shape (B,)


# ------------------------------ params & data --------------------------------

def init_params(key, in_features, kge_dim, rel_total, heads_out_feat_params, blocks_params):
    def nrm(k, shape, scale=0.1):
        return scale * jax.random.normal(k, shape, jnp.float32)
    keys = iter(jax.random.split(key, 64))
    params = {"initial_norm": {"w": jnp.ones((in_features,), jnp.float32),
                               "b": jnp.zeros((in_features,), jnp.float32)}}
    blocks, net_norms = [], []
    f_in = in_features
    for out_ch, n_heads in zip(heads_out_feat_params, blocks_params):
        hc = out_ch * n_heads
        gat = {"w": nrm(next(keys), (f_in, hc)),
               "att_src": nrm(next(keys), (n_heads, out_ch)),
               "att_dst": nrm(next(keys), (n_heads, out_ch)),
               "bias": jnp.zeros((hc,), jnp.float32)}
        sag = {"w_rel": nrm(next(keys), (hc, 1)),      # GraphConv lin_rel (with bias)
               "w_root": nrm(next(keys), (hc, 1)),     # GraphConv lin_root (no bias)
               "b_rel": jnp.zeros((1,), jnp.float32)}
        blocks.append({"gat": gat, "sag": sag})
        net_norms.append({"w": jnp.ones((hc,), jnp.float32),
                          "b": jnp.zeros((hc,), jnp.float32)})
        f_in = hc
    params["blocks"] = blocks
    params["net_norms"] = net_norms
    d2 = kge_dim // 2
    params["co"] = {"w_q": nrm(next(keys), (kge_dim, d2)),
                    "w_k": nrm(next(keys), (kge_dim, d2)),
                    "bias": nrm(next(keys), (d2,)),
                    "a": nrm(next(keys), (d2,))}
    params["rescal"] = {"rel_emb": nrm(next(keys), (rel_total, kge_dim * kge_dim))}
    # TODO(synk): nn.Linear(384, 64) exists in __init__ but is never used in forward; omitted.
    return params


def make_chain_graphs(sizes):
    """Deterministic batched graphs: bidirectional chain per graph."""
    src, dst, batch = [], [], []
    off = 0
    for g, n in enumerate(sizes):
        for i in range(n - 1):
            src += [off + i, off + i + 1]
            dst += [off + i + 1, off + i]
        batch += [g] * n
        off += n
    return jnp.array([src, dst], dtype=jnp.int32), jnp.array(batch, dtype=jnp.int32)


if __name__ == "__main__":
    in_features = 32
    hidd_dim = 64                        # declared in __init__, not on the forward hot path
    kge_dim = 32
    rel_total = 8
    heads_out_feat_params = (16, 16)
    blocks_params = (2, 2)               # n_heads per block; heads*out == kge_dim

    key = jax.random.PRNGKey(0)
    kx1, kx2, kp = jax.random.split(key, 3)

    h_edge, h_batch = make_chain_graphs([7, 5])   # 2 "head" graphs, 12 nodes total
    t_edge, t_batch = make_chain_graphs([6, 4])   # 2 "tail" graphs, 10 nodes total
    num_graphs = 2
    h_x = jax.random.normal(kx1, (12, in_features), jnp.float32)
    t_x = jax.random.normal(kx2, (10, in_features), jnp.float32)
    rels = jnp.array([1, 3], dtype=jnp.int32)     # relation ids of the triples (the `label`)

    params = init_params(kp, in_features, kge_dim, rel_total,
                         heads_out_feat_params, blocks_params)

    forward = jax.jit(ssi_ddi_forward,
                      static_argnames=("num_graphs", "heads_out_feat_params", "blocks_params"))
    scores = forward(params, h_x, h_edge, h_batch, t_x, t_edge, t_batch, rels,
                     num_graphs=num_graphs,
                     heads_out_feat_params=heads_out_feat_params,
                     blocks_params=blocks_params)
    jax.block_until_ready(scores)
    assert scores.shape == (num_graphs,)
    print("KERNEL_OK")
</pallas_src>

<mosaic_0001>
module attributes {stable_mosaic.version = 11 : i64} {
  func.func @_sag_readout_kernel(%arg0: i32, %arg1: memref<12x32xf32, #tpu.memory_space<vmem>>, %arg2: memref<12x12xi8, #tpu.memory_space<vmem>>, %arg3: memref<1x32xf32, #tpu.memory_space<vmem>>, %arg4: memref<1x32xf32, #tpu.memory_space<vmem>>, %arg5: memref<1x1xf32, #tpu.memory_space<vmem>>, %arg6: memref<2x12xf32, #tpu.memory_space<vmem>>, %arg7: memref<2x32xf32, #tpu.memory_space<vmem>>) attributes {dimension_semantics = [#tpu.dimension_semantics<arbitrary>], iteration_bounds = array<i64: 1>, scalar_prefetch = 0 : i64, scratch_operands = 0 : i64, tpu.core_type = #tpu.core_type<tc>, window_params = [{pipeline_mode = #tpu.pipeline_mode<synchronous>, transform_indices = @transform_0, window_bounds = array<i64: 12, 32>}, {pipeline_mode = #tpu.pipeline_mode<synchronous>, transform_indices = @transform_1, window_bounds = array<i64: 12, 12>}, {pipeline_mode = #tpu.pipeline_mode<synchronous>, transform_indices = @transform_2, window_bounds = array<i64: 1, 32>}, {pipeline_mode = #tpu.pipeline_mode<synchronous>, transform_indices = @transform_3, window_bounds = array<i64: 1, 32>}, {pipeline_mode = #tpu.pipeline_mode<synchronous>, transform_indices = @transform_4, window_bounds = array<i64: 1, 1>}, {pipeline_mode = #tpu.pipeline_mode<synchronous>, transform_indices = @transform_5, window_bounds = array<i64: 2, 12>}, {pipeline_mode = #tpu.pipeline_mode<synchronous>, transform_indices = @transform_6, window_bounds = array<i64: 2, 32>}]} {
    %c0 = arith.constant 0 : index
    %c0_0 = arith.constant 0 : index
    %0 = vector.load %arg1[%c0, %c0_0] : memref<12x32xf32, #tpu.memory_space<vmem>>, vector<12x32xf32>
    %c0_1 = arith.constant 0 : index
    %c0_2 = arith.constant 0 : index
    %1 = vector.load %arg2[%c0_1, %c0_2] : memref<12x12xi8, #tpu.memory_space<vmem>>, vector<12x12xi8>
    %2 = arith.sitofp %1 : vector<12x12xi8> to vector<12x12xf32>
    %c0_3 = arith.constant 0 : index
    %c0_4 = arith.constant 0 : index
    %3 = vector.load %arg6[%c0_3, %c0_4] : memref<2x12xf32, #tpu.memory_space<vmem>>, vector<2x12xf32>
    %cst = arith.constant dense<0.000000e+00> : vector<12x32xf32>
    %4 = tpu.matmul %2, %0, %cst {dimension_numbers = #tpu.dot_dimension_numbers<[1], [0], [0], [1], [0, 0, 1, 1], [], []>} : vector<12x12xf32>, vector<12x32xf32>, vector<12x32xf32> -> vector<12x32xf32>
    %c0_5 = arith.constant 0 : index
    %c0_6 = arith.constant 0 : index
    %5 = vector.load %arg3[%c0_5, %c0_6] : memref<1x32xf32, #tpu.memory_space<vmem>>, vector<1x32xf32>
    %cst_7 = arith.constant dense<0.000000e+00> : vector<1x12xf32>
    %6 = tpu.matmul %5, %4, %cst_7 {dimension_numbers = #tpu.dot_dimension_numbers<[1], [1], [0], [0], [0, 0, 1, 0], [], []>} : vector<1x32xf32>, vector<12x32xf32>, vector<1x12xf32> -> vector<1x12xf32>
    %c0_8 = arith.constant 0 : index
    %c0_9 = arith.constant 0 : index
    %7 = vector.load %arg4[%c0_8, %c0_9] : memref<1x32xf32, #tpu.memory_space<vmem>>, vector<1x32xf32>
    %cst_10 = arith.constant dense<0.000000e+00> : vector<1x12xf32>
    %8 = tpu.matmul %7, %0, %cst_10 {dimension_numbers = #tpu.dot_dimension_numbers<[1], [1], [0], [0], [0, 0, 1, 0], [], []>} : vector<1x32xf32>, vector<12x32xf32>, vector<1x12xf32> -> vector<1x12xf32>
    %9 = arith.addf %6, %8 : vector<1x12xf32>
    %c0_11 = arith.constant 0 : index
    %c0_12 = arith.constant 0 : index
    %10 = vector.load %arg5[%c0_11, %c0_12] : memref<1x1xf32, #tpu.memory_space<vmem>>, vector<1x1xf32>
    %11 = vector.broadcast %10 : vector<1x1xf32> to vector<1x12xf32>
    %12 = arith.addf %9, %11 : vector<1x12xf32>
    %cst_13 = arith.constant 1.000000e+00 : f32
    %13 = vector.broadcast %cst_13 : f32 to vector<2x12xf32>
    %14 = arith.subf %3, %13 : vector<2x12xf32>
    %cst_14 = arith.constant 1.000000e+30 : f32
    %15 = vector.broadcast %cst_14 : f32 to vector<2x12xf32>
    %16 = arith.mulf %14, %15 : vector<2x12xf32>
    %17 = vector.broadcast %12 : vector<1x12xf32> to vector<2x12xf32>
    %18 = arith.addf %17, %16 : vector<2x12xf32>
    %cst_15 = arith.constant dense<0xFF800000> : vector<2xf32>
    %19 = vector.multi_reduction <maximumf>, %18, %cst_15 [1] : vector<2x12xf32> to vector<2xf32>
    %20 = vector.shape_cast %19 : vector<2xf32> to vector<2x1xf32>
    %21 = vector.broadcast %20 : vector<2x1xf32> to vector<2x12xf32>
    %22 = arith.mulf %3, %21 : vector<2x12xf32>
    %cst_16 = arith.constant dense<0.000000e+00> : vector<12xf32>
    %23 = vector.multi_reduction <add>, %22, %cst_16 [0] : vector<2x12xf32> to vector<12xf32>
    %24 = vector.shape_cast %23 : vector<12xf32> to vector<1x12xf32>
    %25 = arith.subf %12, %24 : vector<1x12xf32>
    %26 = math.exp %25 : vector<1x12xf32>
    %27 = vector.broadcast %26 : vector<1x12xf32> to vector<2x12xf32>
    %28 = arith.mulf %3, %27 : vector<2x12xf32>
    %cst_17 = arith.constant dense<0.000000e+00> : vector<2xf32>
    %29 = vector.multi_reduction <add>, %28, %cst_17 [1] : vector<2x12xf32> to vector<2xf32>
    %30 = vector.shape_cast %29 : vector<2xf32> to vector<2x1xf32>
    %31 = vector.broadcast %30 : vector<2x1xf32> to vector<2x12xf32>
    %32 = arith.mulf %3, %31 : vector<2x12xf32>
    %cst_18 = arith.constant dense<0.000000e+00> : vector<12xf32>
    %33 = vector.multi_reduction <add>, %32, %cst_18 [0] : vector<2x12xf32> to vector<12xf32>
    %34 = vector.shape_cast %33 : vector<12xf32> to vector<1x12xf32>
    %35 = arith.divf %26, %34 : vector<1x12xf32>
    %36 = vector.broadcast %35 : vector<1x12xf32> to vector<2x12xf32>
    %37 = arith.mulf %3, %36 : vector<2x12xf32>
    %cst_19 = arith.constant dense<0.000000e+00> : vector<2x32xf32>
    %38 = tpu.matmul %37, %0, %cst_19 {dimension_numbers = #tpu.dot_dimension_numbers<[1], [0], [0], [1], [0, 0, 1, 1], [], []>} : vector<2x12xf32>, vector<12x32xf32>, vector<2x32xf32> -> vector<2x32xf32>
    %c0_20 = arith.constant 0 : index
    %c0_21 = arith.constant 0 : index
    %39 = vector.load %arg7[%c0_20, %c0_21] : memref<2x32xf32, #tpu.memory_space<vmem>>, vector<2x32xf32>
    tpu.vector_store %arg7[%c0_20, %c0_21], %38 {strides = array<i32>} : memref<2x32xf32, #tpu.memory_space<vmem>>, vector<2x32xf32>,
    return
  }
  func.func @transform_0(%arg0: i32) -> (i32, i32) {
    %c0_i32 = arith.constant 0 : i32
    %c0_i32_0 = arith.constant 0 : i32
    %c0_i32_1 = arith.constant 0 : i32
    return %c0_i32, %c0_i32_0 : i32, i32
  }
  func.func @transform_1(%arg0: i32) -> (i32, i32) {
    %c0_i32 = arith.constant 0 : i32
    %c0_i32_0 = arith.constant 0 : i32
    %c0_i32_1 = arith.constant 0 : i32
    return %c0_i32, %c0_i32_0 : i32, i32
  }
  func.func @transform_2(%arg0: i32) -> (i32, i32) {
    %c0_i32 = arith.constant 0 : i32
    %c0_i32_0 = arith.constant 0 : i32
    %c0_i32_1 = arith.constant 0 : i32
    return %c0_i32, %c0_i32_0 : i32, i32
  }
  func.func @transform_3(%arg0: i32) -> (i32, i32) {
    %c0_i32 = arith.constant 0 : i32
    %c0_i32_0 = arith.constant 0 : i32
    %c0_i32_1 = arith.constant 0 : i32
    return %c0_i32, %c0_i32_0 : i32, i32
  }
  func.func @transform_4(%arg0: i32) -> (i32, i32) {
    %c0_i32 = arith.constant 0 : i32
    %c0_i32_0 = arith.constant 0 : i32
    %c0_i32_1 = arith.constant 0 : i32
    return %c0_i32, %c0_i32_0 : i32, i32
  }
  func.func @transform_5(%arg0: i32) -> (i32, i32) {
    %c0_i32 = arith.constant 0 : i32
    %c0_i32_0 = arith.constant 0 : i32
    %c0_i32_1 = arith.constant 0 : i32
    return %c0_i32, %c0_i32_0 : i32, i32
  }
  func.func @transform_6(%arg0: i32) -> (i32, i32) {
    %c0_i32 = arith.constant 0 : i32
    %c0_i32_0 = arith.constant 0 : i32
    %c0_i32_1 = arith.constant 0 : i32
    return %c0_i32, %c0_i32_0 : i32, i32
  }
}

module attributes {stable_mosaic.version = 11 : i64} {
  func.func @_gat_fused_kernel(%arg0: i32, %arg1: memref<12x32xbf16, #tpu.memory_space<vmem>>, %arg2: memref<32x32xbf16, #tpu.memory_space<vmem>>, %arg3: memref<2x32xf32, #tpu.memory_space<vmem>>, %arg4: memref<32x2xf32, #tpu.memory_space<vmem>>, %arg5: memref<12x12xi8, #tpu.memory_space<vmem>>, %arg6: memref<1x32xf32, #tpu.memory_space<vmem>>, %arg7: memref<12x32xf32, #tpu.memory_space<vmem>>) attributes {dimension_semantics = [#tpu.dimension_semantics<arbitrary>], iteration_bounds = array<i64: 1>, scalar_prefetch = 0 : i64, scratch_operands = 0 : i64, tpu.core_type = #tpu.core_type<tc>, window_params = [{pipeline_mode = #tpu.pipeline_mode<synchronous>, transform_indices = @transform_0, window_bounds = array<i64: 12, 32>}, {pipeline_mode = #tpu.pipeline_mode<synchronous>, transform_indices = @transform_1, window_bounds = array<i64: 32, 32>}, {pipeline_mode = #tpu.pipeline_mode<synchronous>, transform_indices = @transform_2, window_bounds = array<i64: 2, 32>}, {pipeline_mode = #tpu.pipeline_mode<synchronous>, transform_indices = @transform_3, window_bounds = array<i64: 32, 2>}, {pipeline_mode = #tpu.pipeline_mode<synchronous>, transform_indices = @transform_4, window_bounds = array<i64: 12, 12>}, {pipeline_mode = #tpu.pipeline_mode<synchronous>, transform_indices = @transform_5, window_bounds = array<i64: 1, 32>}, {pipeline_mode = #tpu.pipeline_mode<synchronous>, transform_indices = @transform_6, window_bounds = array<i64: 12, 32>}]} {
    %c0 = arith.constant 0 : index
    %c0_0 = arith.constant 0 : index
    %0 = vector.load %arg1[%c0, %c0_0] : memref<12x32xbf16, #tpu.memory_space<vmem>>, vector<12x32xbf16>
    %c0_1 = arith.constant 0 : index
    %c0_2 = arith.constant 0 : index
    %1 = vector.load %arg2[%c0_1, %c0_2] : memref<32x32xbf16, #tpu.memory_space<vmem>>, vector<32x32xbf16>
    %cst = arith.constant dense<0.000000e+00> : vector<12x32xf32>
    %2 = tpu.matmul %0, %1, %cst {dimension_numbers = #tpu.dot_dimension_numbers<[1], [0], [0], [1], [0, 0, 1, 1], [], []>} : vector<12x32xbf16>, vector<32x32xbf16>, vector<12x32xf32> -> vector<12x32xf32>
    %c0_3 = arith.constant 0 : index
    %c0_4 = arith.constant 0 : index
    %3 = vector.load %arg3[%c0_3, %c0_4] : memref<2x32xf32, #tpu.memory_space<vmem>>, vector<2x32xf32>
    %cst_5 = arith.constant dense<0.000000e+00> : vector<2x12xf32>
    %4 = tpu.matmul %3, %2, %cst_5 {dimension_numbers = #tpu.dot_dimension_numbers<[1], [1], [0], [0], [0, 0, 1, 0], [], []>} : vector<2x32xf32>, vector<12x32xf32>, vector<2x12xf32> -> vector<2x12xf32>
    %c0_6 = arith.constant 0 : index
    %c0_7 = arith.constant 0 : index
    %5 = vector.load %arg4[%c0_6, %c0_7] : memref<32x2xf32, #tpu.memory_space<vmem>>, vector<32x2xf32>
    %cst_8 = arith.constant dense<0.000000e+00> : vector<12x2xf32>
    %6 = tpu.matmul %2, %5, %cst_8 {dimension_numbers = #tpu.dot_dimension_numbers<[1], [0], [0], [1], [0, 0, 1, 1], [], []>} : vector<12x32xf32>, vector<32x2xf32>, vector<12x2xf32> -> vector<12x2xf32>
    %7 = tpu.iota {dimensions = array<i32: 0>} : vector<12x12xi32>
    %8 = tpu.iota {dimensions = array<i32: 1>} : vector<12x12xi32>
    %c0_9 = arith.constant 0 : index
    %c0_10 = arith.constant 0 : index
    %9 = vector.load %arg5[%c0_9, %c0_10] : memref<12x12xi8, #tpu.memory_space<vmem>>, vector<12x12xi8>
    %10 = arith.sitofp %9 : vector<12x12xi8> to vector<12x12xf32>
    %cst_11 = arith.constant 5.000000e-01 : f32
    %11 = vector.broadcast %cst_11 : f32 to vector<12x12xf32>
    %12 = arith.cmpf ogt, %10, %11 : vector<12x12xf32>
    %13 = arith.cmpi eq, %7, %8 : vector<12x12xi32>
    %14 = arith.ori %12, %13 : vector<12x12xi1>
    %15 = arith.truncf %2 : vector<12x32xf32> to vector<12x32xbf16>
    %c0_12 = arith.constant 0 : index
    %c0_13 = arith.constant 0 : index
    %16 = vector.load %arg6[%c0_12, %c0_13] : memref<1x32xf32, #tpu.memory_space<vmem>>, vector<1x32xf32>
    %17 = vector.extract_strided_slice %6 {offsets = [0, 0], sizes = [12, 1], strides = [1, 1]} : vector<12x2xf32> to vector<12x1xf32>
    %18 = vector.extract_strided_slice %4 {offsets = [0, 0], sizes = [1, 12], strides = [1, 1]} : vector<2x12xf32> to vector<1x12xf32>
    %19 = vector.broadcast %17 : vector<12x1xf32> to vector<12x12xf32>
    %20 = vector.broadcast %18 : vector<1x12xf32> to vector<12x12xf32>
    %21 = arith.addf %19, %20 : vector<12x12xf32>
    %cst_14 = arith.constant 0.000000e+00 : f32
    %22 = vector.broadcast %cst_14 : f32 to vector<12x12xf32>
    %23 = arith.cmpf ogt, %21, %22 : vector<12x12xf32>
    %cst_15 = arith.constant 2.000000e-01 : f32
    %24 = vector.broadcast %cst_15 : f32 to vector<12x12xf32>
    %25 = arith.mulf %24, %21 : vector<12x12xf32>
    %26 = arith.select %23, %21, %25 : vector<12x12xi1>, vector<12x12xf32>
    %cst_16 = arith.constant -1.000000e+30 : f32
    %27 = vector.broadcast %cst_16 : f32 to vector<12x12xf32>
    %28 = arith.select %14, %26, %27 : vector<12x12xi1>, vector<12x12xf32>
    %cst_17 = arith.constant dense<0xFF800000> : vector<12xf32>
    %29 = vector.multi_reduction <maximumf>, %28, %cst_17 [1] : vector<12x12xf32> to vector<12xf32>
    %30 = vector.shape_cast %29 : vector<12xf32> to vector<12x1xf32>
    %31 = vector.broadcast %30 : vector<12x1xf32> to vector<12x12xf32>
    %32 = arith.subf %28, %31 : vector<12x12xf32>
    %33 = math.exp %32 : vector<12x12xf32>
    %cst_18 = arith.constant dense<0.000000e+00> : vector<12xf32>
    %34 = vector.multi_reduction <add>, %33, %cst_18 [1] : vector<12x12xf32> to vector<12xf32>
    %35 = vector.shape_cast %34 : vector<12xf32> to vector<12x1xf32>
    %36 = tpu.reciprocal %35 {approx = true} : vector<12x1xf32> -> vector<12x1xf32>
    %37 = vector.broadcast %36 : vector<12x1xf32> to vector<12x12xf32>
    %38 = arith.mulf %33, %37 : vector<12x12xf32>
    %39 = arith.truncf %38 : vector<12x12xf32> to vector<12x12xbf16>
    %40 = vector.extract_strided_slice %15 {offsets = [0, 0], sizes = [12, 16], strides = [1, 1]} : vector<12x32xbf16> to vector<12x16xbf16>
    %cst_19 = arith.constant dense<0.000000e+00> : vector<12x16xf32>
    %41 = tpu.matmul %39, %40, %cst_19 {dimension_numbers = #tpu.dot_dimension_numbers<[1], [0], [0], [1], [0, 0, 1, 1], [], []>} : vector<12x12xbf16>, vector<12x16xbf16>, vector<12x16xf32> -> vector<12x16xf32>
    %42 = vector.extract_strided_slice %16 {offsets = [0, 0], sizes = [1, 16], strides = [1, 1]} : vector<1x32xf32> to vector<1x16xf32>
    %43 = vector.broadcast %42 : vector<1x16xf32> to vector<12x16xf32>
    %44 = arith.addf %41, %43 : vector<12x16xf32>
    %c0_20 = arith.constant 0 : index
    %c0_21 = arith.constant 0 : index
    %45 = vector.load %arg7[%c0_20, %c0_21] : memref<12x32xf32, #tpu.memory_space<vmem>>, vector<12x16xf32>
    tpu.vector_store %arg7[%c0_20, %c0_21], %44 {strides = array<i32>} : memref<12x32xf32, #tpu.memory_space<vmem>>, vector<12x16xf32>,
    %46 = vector.extract_strided_slice %6 {offsets = [0, 1], sizes = [12, 1], strides = [1, 1]} : vector<12x2xf32> to vector<12x1xf32>
    %47 = vector.extract_strided_slice %4 {offsets = [1, 0], sizes = [1, 12], strides = [1, 1]} : vector<2x12xf32> to vector<1x12xf32>
    %48 = vector.broadcast %46 : vector<12x1xf32> to vector<12x12xf32>
    %49 = vector.broadcast %47 : vector<1x12xf32> to vector<12x12xf32>
    %50 = arith.addf %48, %49 : vector<12x12xf32>
    %cst_22 = arith.constant 0.000000e+00 : f32
    %51 = vector.broadcast %cst_22 : f32 to vector<12x12xf32>
    %52 = arith.cmpf ogt, %50, %51 : vector<12x12xf32>
    %cst_23 = arith.constant 2.000000e-01 : f32
    %53 = vector.broadcast %cst_23 : f32 to vector<12x12xf32>
    %54 = arith.mulf %53, %50 : vector<12x12xf32>
    %55 = arith.select %52, %50, %54 : vector<12x12xi1>, vector<12x12xf32>
    %cst_24 = arith.constant -1.000000e+30 : f32
    %56 = vector.broadcast %cst_24 : f32 to vector<12x12xf32>
    %57 = arith.select %14, %55, %56 : vector<12x12xi1>, vector<12x12xf32>
    %cst_25 = arith.constant dense<0xFF800000> : vector<12xf32>
    %58 = vector.multi_reduction <maximumf>, %57, %cst_25 [1] : vector<12x12xf32> to vector<12xf32>
    %59 = vector.shape_cast %58 : vector<12xf32> to vector<12x1xf32>
    %60 = vector.broadcast %59 : vector<12x1xf32> to vector<12x12xf32>
    %61 = arith.subf %57, %60 : vector<12x12xf32>
    %62 = math.exp %61 : vector<12x12xf32>
    %cst_26 = arith.constant dense<0.000000e+00> : vector<12xf32>
    %63 = vector.multi_reduction <add>, %62, %cst_26 [1] : vector<12x12xf32> to vector<12xf32>
    %64 = vector.shape_cast %63 : vector<12xf32> to vector<12x1xf32>
    %65 = tpu.reciprocal %64 {approx = true} : vector<12x1xf32> -> vector<12x1xf32>
    %66 = vector.broadcast %65 : vector<12x1xf32> to vector<12x12xf32>
    %67 = arith.mulf %62, %66 : vector<12x12xf32>
    %68 = arith.truncf %67 : vector<12x12xf32> to vector<12x12xbf16>
    %69 = vector.extract_strided_slice %15 {offsets = [0, 16], sizes = [12, 16], strides = [1, 1]} : vector<12x32xbf16> to vector<12x16xbf16>
    %cst_27 = arith.constant dense<0.000000e+00> : vector<12x16xf32>
    %70 = tpu.matmul %68, %69, %cst_27 {dimension_numbers = #tpu.dot_dimension_numbers<[1], [0], [0], [1], [0, 0, 1, 1], [], []>} : vector<12x12xbf16>, vector<12x16xbf16>, vector<12x16xf32> -> vector<12x16xf32>
    %71 = vector.extract_strided_slice %16 {offsets = [0, 16], sizes = [1, 16], strides = [1, 1]} : vector<1x32xf32> to vector<1x16xf32>
    %72 = vector.broadcast %71 : vector<1x16xf32> to vector<12x16xf32>
    %73 = arith.addf %70, %72 : vector<12x16xf32>
    %c0_28 = arith.constant 0 : index
    %c16 = arith.constant 16 : index
    %74 = vector.load %arg7[%c0_28, %c16] : memref<12x32xf32, #tpu.memory_space<vmem>>, vector<12x16xf32>
    tpu.vector_store %arg7[%c0_28, %c16], %73 {strides = array<i32>} : memref<12x32xf32, #tpu.memory_space<vmem>>, vector<12x16xf32>,
    return
  }
  func.func @transform_0(%arg0: i32) -> (i32, i32) {
    %c0_i32 = arith.constant 0 : i32
    %c0_i32_0 = arith.constant 0 : i32
    %c0_i32_1 = arith.constant 0 : i32
    return %c0_i32, %c0_i32_0 : i32, i32
  }
  func.func @transform_1(%arg0: i32) -> (i32, i32) {
    %c0_i32 = arith.constant 0 : i32
    %c0_i32_0 = arith.constant 0 : i32
    %c0_i32_1 = arith.constant 0 : i32
    return %c0_i32, %c0_i32_0 : i32, i32
  }
  func.func @transform_2(%arg0: i32) -> (i32, i32) {
    %c0_i32 = arith.constant 0 : i32
    %c0_i32_0 = arith.constant 0 : i32
    %c0_i32_1 = arith.constant 0 : i32
    return %c0_i32, %c0_i32_0 : i32, i32
  }
  func.func @transform_3(%arg0: i32) -> (i32, i32) {
    %c0_i32 = arith.constant 0 : i32
    %c0_i32_0 = arith.constant 0 : i32
    %c0_i32_1 = arith.constant 0 : i32
    return %c0_i32, %c0_i32_0 : i32, i32
  }
  func.func @transform_4(%arg0: i32) -> (i32, i32) {
    %c0_i32 = arith.constant 0 : i32
    %c0_i32_0 = arith.constant 0 : i32
    %c0_i32_1 = arith.constant 0 : i32
    return %c0_i32, %c0_i32_0 : i32, i32
  }
  func.func @transform_5(%arg0: i32) -> (i32, i32) {
    %c0_i32 = arith.constant 0 : i32
    %c0_i32_0 = arith.constant 0 : i32
    %c0_i32_1 = arith.constant 0 : i32
    return %c0_i32, %c0_i32_0 : i32, i32
  }
  func.func @transform_6(%arg0: i32) -> (i32, i32) {
    %c0_i32 = arith.constant 0 : i32
    %c0_i32_0 = arith.constant 0 : i32
    %c0_i32_1 = arith.constant 0 : i32
    return %c0_i32, %c0_i32_0 : i32, i32
  }
}

module attributes {stable_mosaic.version = 11 : i64} {
  func.func @_gat_fused_kernel(%arg0: i32, %arg1: memref<10x32xbf16, #tpu.memory_space<vmem>>, %arg2: memref<32x32xbf16, #tpu.memory_space<vmem>>, %arg3: memref<2x32xf32, #tpu.memory_space<vmem>>, %arg4: memref<32x2xf32, #tpu.memory_space<vmem>>, %arg5: memref<10x10xi8, #tpu.memory_space<vmem>>, %arg6: memref<1x32xf32, #tpu.memory_space<vmem>>, %arg7: memref<10x32xf32, #tpu.memory_space<vmem>>) attributes {dimension_semantics = [#tpu.dimension_semantics<arbitrary>], iteration_bounds = array<i64: 1>, scalar_prefetch = 0 : i64, scratch_operands = 0 : i64, tpu.core_type = #tpu.core_type<tc>, window_params = [{pipeline_mode = #tpu.pipeline_mode<synchronous>, transform_indices = @transform_0, window_bounds = array<i64: 10, 32>}, {pipeline_mode = #tpu.pipeline_mode<synchronous>, transform_indices = @transform_1, window_bounds = array<i64: 32, 32>}, {pipeline_mode = #tpu.pipeline_mode<synchronous>, transform_indices = @transform_2, window_bounds = array<i64: 2, 32>}, {pipeline_mode = #tpu.pipeline_mode<synchronous>, transform_indices = @transform_3, window_bounds = array<i64: 32, 2>}, {pipeline_mode = #tpu.pipeline_mode<synchronous>, transform_indices = @transform_4, window_bounds = array<i64: 10, 10>}, {pipeline_mode = #tpu.pipeline_mode<synchronous>, transform_indices = @transform_5, window_bounds = array<i64: 1, 32>}, {pipeline_mode = #tpu.pipeline_mode<synchronous>, transform_indices = @transform_6, window_bounds = array<i64: 10, 32>}]} {
    %c0 = arith.constant 0 : index
    %c0_0 = arith.constant 0 : index
    %0 = vector.load %arg1[%c0, %c0_0] : memref<10x32xbf16, #tpu.memory_space<vmem>>, vector<10x32xbf16>
    %c0_1 = arith.constant 0 : index
    %c0_2 = arith.constant 0 : index
    %1 = vector.load %arg2[%c0_1, %c0_2] : memref<32x32xbf16, #tpu.memory_space<vmem>>, vector<32x32xbf16>
    %cst = arith.constant dense<0.000000e+00> : vector<10x32xf32>
    %2 = tpu.matmul %0, %1, %cst {dimension_numbers = #tpu.dot_dimension_numbers<[1], [0], [0], [1], [0, 0, 1, 1], [], []>} : vector<10x32xbf16>, vector<32x32xbf16>, vector<10x32xf32> -> vector<10x32xf32>
    %c0_3 = arith.constant 0 : index
    %c0_4 = arith.constant 0 : index
    %3 = vector.load %arg3[%c0_3, %c0_4] : memref<2x32xf32, #tpu.memory_space<vmem>>, vector<2x32xf32>
    %cst_5 = arith.constant dense<0.000000e+00> : vector<2x10xf32>
    %4 = tpu.matmul %3, %2, %cst_5 {dimension_numbers = #tpu.dot_dimension_numbers<[1], [1], [0], [0], [0, 0, 1, 0], [], []>} : vector<2x32xf32>, vector<10x32xf32>, vector<2x10xf32> -> vector<2x10xf32>
    %c0_6 = arith.constant 0 : index
    %c0_7 = arith.constant 0 : index
    %5 = vector.load %arg4[%c0_6, %c0_7] : memref<32x2xf32, #tpu.memory_space<vmem>>, vector<32x2xf32>
    %cst_8 = arith.constant dense<0.000000e+00> : vector<10x2xf32>
    %6 = tpu.matmul %2, %5, %cst_8 {dimension_numbers = #tpu.dot_dimension_numbers<[1], [0], [0], [1], [0, 0, 1, 1], [], []>} : vector<10x32xf32>, vector<32x2xf32>, vector<10x2xf32> -> vector<10x2xf32>
    %7 = tpu.iota {dimensions = array<i32: 0>} : vector<10x10xi32>
    %8 = tpu.iota {dimensions = array<i32: 1>} : vector<10x10xi32>
    %c0_9 = arith.constant 0 : index
    %c0_10 = arith.constant 0 : index
    %9 = vector.load %arg5[%c0_9, %c0_10] : memref<10x10xi8, #tpu.memory_space<vmem>>, vector<10x10xi8>
    %10 = arith.sitofp %9 : vector<10x10xi8> to vector<10x10xf32>
    %cst_11 = arith.constant 5.000000e-01 : f32
    %11 = vector.broadcast %cst_11 : f32 to vector<10x10xf32>
    %12 = arith.cmpf ogt, %10, %11 : vector<10x10xf32>
    %13 = arith.cmpi eq, %7, %8 : vector<10x10xi32>
    %14 = arith.ori %12, %13 : vector<10x10xi1>
    %15 = arith.truncf %2 : vector<10x32xf32> to vector<10x32xbf16>
    %c0_12 = arith.constant 0 : index
    %c0_13 = arith.constant 0 : index
    %16 = vector.load %arg6[%c0_12, %c0_13] : memref<1x32xf32, #tpu.memory_space<vmem>>, vector<1x32xf32>
    %17 = vector.extract_strided_slice %6 {offsets = [0, 0], sizes = [10, 1], strides = [1, 1]} : vector<10x2xf32> to vector<10x1xf32>
    %18 = vector.extract_strided_slice %4 {offsets = [0, 0], sizes = [1, 10], strides = [1, 1]} : vector<2x10xf32> to vector<1x10xf32>
    %19 = vector.broadcast %17 : vector<10x1xf32> to vector<10x10xf32>
    %20 = vector.broadcast %18 : vector<1x10xf32> to vector<10x10xf32>
    %21 = arith.addf %19, %20 : vector<10x10xf32>
    %cst_14 = arith.constant 0.000000e+00 : f32
    %22 = vector.broadcast %cst_14 : f32 to vector<10x10xf32>
    %23 = arith.cmpf ogt, %21, %22 : vector<10x10xf32>
    %cst_15 = arith.constant 2.000000e-01 : f32
    %24 = vector.broadcast %cst_15 : f32 to vector<10x10xf32>
    %25 = arith.mulf %24, %21 : vector<10x10xf32>
    %26 = arith.select %23, %21, %25 : vector<10x10xi1>, vector<10x10xf32>
    %cst_16 = arith.constant -1.000000e+30 : f32
    %27 = vector.broadcast %cst_16 : f32 to vector<10x10xf32>
    %28 = arith.select %14, %26, %27 : vector<10x10xi1>, vector<10x10xf32>
    %cst_17 = arith.constant dense<0xFF800000> : vector<10xf32>
    %29 = vector.multi_reduction <maximumf>, %28, %cst_17 [1] : vector<10x10xf32> to vector<10xf32>
    %30 = vector.shape_cast %29 : vector<10xf32> to vector<10x1xf32>
    %31 = vector.broadcast %30 : vector<10x1xf32> to vector<10x10xf32>
    %32 = arith.subf %28, %31 : vector<10x10xf32>
    %33 = math.exp %32 : vector<10x10xf32>
    %cst_18 = arith.constant dense<0.000000e+00> : vector<10xf32>
    %34 = vector.multi_reduction <add>, %33, %cst_18 [1] : vector<10x10xf32> to vector<10xf32>
    %35 = vector.shape_cast %34 : vector<10xf32> to vector<10x1xf32>
    %36 = tpu.reciprocal %35 {approx = true} : vector<10x1xf32> -> vector<10x1xf32>
    %37 = vector.broadcast %36 : vector<10x1xf32> to vector<10x10xf32>
    %38 = arith.mulf %33, %37 : vector<10x10xf32>
    %39 = arith.truncf %38 : vector<10x10xf32> to vector<10x10xbf16>
    %40 = vector.extract_strided_slice %15 {offsets = [0, 0], sizes = [10, 16], strides = [1, 1]} : vector<10x32xbf16> to vector<10x16xbf16>
    %cst_19 = arith.constant dense<0.000000e+00> : vector<10x16xf32>
    %41 = tpu.matmul %39, %40, %cst_19 {dimension_numbers = #tpu.dot_dimension_numbers<[1], [0], [0], [1], [0, 0, 1, 1], [], []>} : vector<10x10xbf16>, vector<10x16xbf16>, vector<10x16xf32> -> vector<10x16xf32>
    %42 = vector.extract_strided_slice %16 {offsets = [0, 0], sizes = [1, 16], strides = [1, 1]} : vector<1x32xf32> to vector<1x16xf32>
    %43 = vector.broadcast %42 : vector<1x16xf32> to vector<10x16xf32>
    %44 = arith.addf %41, %43 : vector<10x16xf32>
    %c0_20 = arith.constant 0 : index
    %c0_21 = arith.constant 0 : index
    %45 = vector.load %arg7[%c0_20, %c0_21] : memref<10x32xf32, #tpu.memory_space<vmem>>, vector<10x16xf32>
    tpu.vector_store %arg7[%c0_20, %c0_21], %44 {strides = array<i32>} : memref<10x32xf32, #tpu.memory_space<vmem>>, vector<10x16xf32>,
    %46 = vector.extract_strided_slice %6 {offsets = [0, 1], sizes = [10, 1], strides = [1, 1]} : vector<10x2xf32> to vector<10x1xf32>
    %47 = vector.extract_strided_slice %4 {offsets = [1, 0], sizes = [1, 10], strides = [1, 1]} : vector<2x10xf32> to vector<1x10xf32>
    %48 = vector.broadcast %46 : vector<10x1xf32> to vector<10x10xf32>
    %49 = vector.broadcast %47 : vector<1x10xf32> to vector<10x10xf32>
    %50 = arith.addf %48, %49 : vector<10x10xf32>
    %cst_22 = arith.constant 0.000000e+00 : f32
    %51 = vector.broadcast %cst_22 : f32 to vector<10x10xf32>
    %52 = arith.cmpf ogt, %50, %51 : vector<10x10xf32>
    %cst_23 = arith.constant 2.000000e-01 : f32
    %53 = vector.broadcast %cst_23 : f32 to vector<10x10xf32>
    %54 = arith.mulf %53, %50 : vector<10x10xf32>
    %55 = arith.select %52, %50, %54 : vector<10x10xi1>, vector<10x10xf32>
    %cst_24 = arith.constant -1.000000e+30 : f32
    %56 = vector.broadcast %cst_24 : f32 to vector<10x10xf32>
    %57 = arith.select %14, %55, %56 : vector<10x10xi1>, vector<10x10xf32>
    %cst_25 = arith.constant dense<0xFF800000> : vector<10xf32>
    %58 = vector.multi_reduction <maximumf>, %57, %cst_25 [1] : vector<10x10xf32> to vector<10xf32>
    %59 = vector.shape_cast %58 : vector<10xf32> to vector<10x1xf32>
    %60 = vector.broadcast %59 : vector<10x1xf32> to vector<10x10xf32>
    %61 = arith.subf %57, %60 : vector<10x10xf32>
    %62 = math.exp %61 : vector<10x10xf32>
    %cst_26 = arith.constant dense<0.000000e+00> : vector<10xf32>
    %63 = vector.multi_reduction <add>, %62, %cst_26 [1] : vector<10x10xf32> to vector<10xf32>
    %64 = vector.shape_cast %63 : vector<10xf32> to vector<10x1xf32>
    %65 = tpu.reciprocal %64 {approx = true} : vector<10x1xf32> -> vector<10x1xf32>
    %66 = vector.broadcast %65 : vector<10x1xf32> to vector<10x10xf32>
    %67 = arith.mulf %62, %66 : vector<10x10xf32>
    %68 = arith.truncf %67 : vector<10x10xf32> to vector<10x10xbf16>
    %69 = vector.extract_strided_slice %15 {offsets = [0, 16], sizes = [10, 16], strides = [1, 1]} : vector<10x32xbf16> to vector<10x16xbf16>
    %cst_27 = arith.constant dense<0.000000e+00> : vector<10x16xf32>
    %70 = tpu.matmul %68, %69, %cst_27 {dimension_numbers = #tpu.dot_dimension_numbers<[1], [0], [0], [1], [0, 0, 1, 1], [], []>} : vector<10x10xbf16>, vector<10x16xbf16>, vector<10x16xf32> -> vector<10x16xf32>
    %71 = vector.extract_strided_slice %16 {offsets = [0, 16], sizes = [1, 16], strides = [1, 1]} : vector<1x32xf32> to vector<1x16xf32>
    %72 = vector.broadcast %71 : vector<1x16xf32> to vector<10x16xf32>
    %73 = arith.addf %70, %72 : vector<10x16xf32>
    %c0_28 = arith.constant 0 : index
    %c16 = arith.constant 16 : index
    %74 = vector.load %arg7[%c0_28, %c16] : memref<10x32xf32, #tpu.memory_space<vmem>>, vector<10x16xf32>
    tpu.vector_store %arg7[%c0_28, %c16], %73 {strides = array<i32>} : memref<10x32xf32, #tpu.memory_space<vmem>>, vector<10x16xf32>,
    return
  }
  func.func @transform_0(%arg0: i32) -> (i32, i32) {
    %c0_i32 = arith.constant 0 : i32
    %c0_i32_0 = arith.constant 0 : i32
    %c0_i32_1 = arith.constant 0 : i32
    return %c0_i32, %c0_i32_0 : i32, i32
  }
  func.func @transform_1(%arg0: i32) -> (i32, i32) {
    %c0_i32 = arith.constant 0 : i32
    %c0_i32_0 = arith.constant 0 : i32
    %c0_i32_1 = arith.constant 0 : i32
    return %c0_i32, %c0_i32_0 : i32, i32
  }
  func.func @transform_2(%arg0: i32) -> (i32, i32) {
    %c0_i32 = arith.constant 0 : i32
    %c0_i32_0 = arith.constant 0 : i32
    %c0_i32_1 = arith.constant 0 : i32
    return %c0_i32, %c0_i32_0 : i32, i32
  }
  func.func @transform_3(%arg0: i32) -> (i32, i32) {
    %c0_i32 = arith.constant 0 : i32
    %c0_i32_0 = arith.constant 0 : i32
    %c0_i32_1 = arith.constant 0 : i32
    return %c0_i32, %c0_i32_0 : i32, i32
  }
  func.func @transform_4(%arg0: i32) -> (i32, i32) {
    %c0_i32 = arith.constant 0 : i32
    %c0_i32_0 = arith.constant 0 : i32
    %c0_i32_1 = arith.constant 0 : i32
    return %c0_i32, %c0_i32_0 : i32, i32
  }
  func.func @transform_5(%arg0: i32) -> (i32, i32) {
    %c0_i32 = arith.constant 0 : i32
    %c0_i32_0 = arith.constant 0 : i32
    %c0_i32_1 = arith.constant 0 : i32
    return %c0_i32, %c0_i32_0 : i32, i32
  }
  func.func @transform_6(%arg0: i32) -> (i32, i32) {
    %c0_i32 = arith.constant 0 : i32
    %c0_i32_0 = arith.constant 0 : i32
    %c0_i32_1 = arith.constant 0 : i32
    return %c0_i32, %c0_i32_0 : i32, i32
  }
}

module attributes {stable_mosaic.version = 11 : i64} {
  func.func @_sag_readout_kernel(%arg0: i32, %arg1: memref<10x32xf32, #tpu.memory_space<vmem>>, %arg2: memref<10x10xi8, #tpu.memory_space<vmem>>, %arg3: memref<1x32xf32, #tpu.memory_space<vmem>>, %arg4: memref<1x32xf32, #tpu.memory_space<vmem>>, %arg5: memref<1x1xf32, #tpu.memory_space<vmem>>, %arg6: memref<2x10xf32, #tpu.memory_space<vmem>>, %arg7: memref<2x32xf32, #tpu.memory_space<vmem>>) attributes {dimension_semantics = [#tpu.dimension_semantics<arbitrary>], iteration_bounds = array<i64: 1>, scalar_prefetch = 0 : i64, scratch_operands = 0 : i64, tpu.core_type = #tpu.core_type<tc>, window_params = [{pipeline_mode = #tpu.pipeline_mode<synchronous>, transform_indices = @transform_0, window_bounds = array<i64: 10, 32>}, {pipeline_mode = #tpu.pipeline_mode<synchronous>, transform_indices = @transform_1, window_bounds = array<i64: 10, 10>}, {pipeline_mode = #tpu.pipeline_mode<synchronous>, transform_indices = @transform_2, window_bounds = array<i64: 1, 32>}, {pipeline_mode = #tpu.pipeline_mode<synchronous>, transform_indices = @transform_3, window_bounds = array<i64: 1, 32>}, {pipeline_mode = #tpu.pipeline_mode<synchronous>, transform_indices = @transform_4, window_bounds = array<i64: 1, 1>}, {pipeline_mode = #tpu.pipeline_mode<synchronous>, transform_indices = @transform_5, window_bounds = array<i64: 2, 10>}, {pipeline_mode = #tpu.pipeline_mode<synchronous>, transform_indices = @transform_6, window_bounds = array<i64: 2, 32>}]} {
    %c0 = arith.constant 0 : index
    %c0_0 = arith.constant 0 : index
    %0 = vector.load %arg1[%c0, %c0_0] : memref<10x32xf32, #tpu.memory_space<vmem>>, vector<10x32xf32>
    %c0_1 = arith.constant 0 : index
    %c0_2 = arith.constant 0 : index
    %1 = vector.load %arg2[%c0_1, %c0_2] : memref<10x10xi8, #tpu.memory_space<vmem>>, vector<10x10xi8>
    %2 = arith.sitofp %1 : vector<10x10xi8> to vector<10x10xf32>
    %c0_3 = arith.constant 0 : index
    %c0_4 = arith.constant 0 : index
    %3 = vector.load %arg6[%c0_3, %c0_4] : memref<2x10xf32, #tpu.memory_space<vmem>>, vector<2x10xf32>
    %cst = arith.constant dense<0.000000e+00> : vector<10x32xf32>
    %4 = tpu.matmul %2, %0, %cst {dimension_numbers = #tpu.dot_dimension_numbers<[1], [0], [0], [1], [0, 0, 1, 1], [], []>} : vector<10x10xf32>, vector<10x32xf32>, vector<10x32xf32> -> vector<10x32xf32>
    %c0_5 = arith.constant 0 : index
    %c0_6 = arith.constant 0 : index
    %5 = vector.load %arg3[%c0_5, %c0_6] : memref<1x32xf32, #tpu.memory_space<vmem>>, vector<1x32xf32>
    %cst_7 = arith.constant dense<0.000000e+00> : vector<1x10xf32>
    %6 = tpu.matmul %5, %4, %cst_7 {dimension_numbers = #tpu.dot_dimension_numbers<[1], [1], [0], [0], [0, 0, 1, 0], [], []>} : vector<1x32xf32>, vector<10x32xf32>, vector<1x10xf32> -> vector<1x10xf32>
    %c0_8 = arith.constant 0 : index
    %c0_9 = arith.constant 0 : index
    %7 = vector.load %arg4[%c0_8, %c0_9] : memref<1x32xf32, #tpu.memory_space<vmem>>, vector<1x32xf32>
    %cst_10 = arith.constant dense<0.000000e+00> : vector<1x10xf32>
    %8 = tpu.matmul %7, %0, %cst_10 {dimension_numbers = #tpu.dot_dimension_numbers<[1], [1], [0], [0], [0, 0, 1, 0], [], []>} : vector<1x32xf32>, vector<10x32xf32>, vector<1x10xf32> -> vector<1x10xf32>
    %9 = arith.addf %6, %8 : vector<1x10xf32>
    %c0_11 = arith.constant 0 : index
    %c0_12 = arith.constant 0 : index
    %10 = vector.load %arg5[%c0_11, %c0_12] : memref<1x1xf32, #tpu.memory_space<vmem>>, vector<1x1xf32>
    %11 = vector.broadcast %10 : vector<1x1xf32> to vector<1x10xf32>
    %12 = arith.addf %9, %11 : vector<1x10xf32>
    %cst_13 = arith.constant 1.000000e+00 : f32
    %13 = vector.broadcast %cst_13 : f32 to vector<2x10xf32>
    %14 = arith.subf %3, %13 : vector<2x10xf32>
    %cst_14 = arith.constant 1.000000e+30 : f32
    %15 = vector.broadcast %cst_14 : f32 to vector<2x10xf32>
    %16 = arith.mulf %14, %15 : vector<2x10xf32>
    %17 = vector.broadcast %12 : vector<1x10xf32> to vector<2x10xf32>
    %18 = arith.addf %17, %16 : vector<2x10xf32>
    %cst_15 = arith.constant dense<0xFF800000> : vector<2xf32>
    %19 = vector.multi_reduction <maximumf>, %18, %cst_15 [1] : vector<2x10xf32> to vector<2xf32>
    %20 = vector.shape_cast %19 : vector<2xf32> to vector<2x1xf32>
    %21 = vector.broadcast %20 : vector<2x1xf32> to vector<2x10xf32>
    %22 = arith.mulf %3, %21 : vector<2x10xf32>
    %cst_16 = arith.constant dense<0.000000e+00> : vector<10xf32>
    %23 = vector.multi_reduction <add>, %22, %cst_16 [0] : vector<2x10xf32> to vector<10xf32>
    %24 = vector.shape_cast %23 : vector<10xf32> to vector<1x10xf32>
    %25 = arith.subf %12, %24 : vector<1x10xf32>
    %26 = math.exp %25 : vector<1x10xf32>
    %27 = vector.broadcast %26 : vector<1x10xf32> to vector<2x10xf32>
    %28 = arith.mulf %3, %27 : vector<2x10xf32>
    %cst_17 = arith.constant dense<0.000000e+00> : vector<2xf32>
    %29 = vector.multi_reduction <add>, %28, %cst_17 [1] : vector<2x10xf32> to vector<2xf32>
    %30 = vector.shape_cast %29 : vector<2xf32> to vector<2x1xf32>
    %31 = vector.broadcast %30 : vector<2x1xf32> to vector<2x10xf32>
    %32 = arith.mulf %3, %31 : vector<2x10xf32>
    %cst_18 = arith.constant dense<0.000000e+00> : vector<10xf32>
    %33 = vector.multi_reduction <add>, %32, %cst_18 [0] : vector<2x10xf32> to vector<10xf32>
    %34 = vector.shape_cast %33 : vector<10xf32> to vector<1x10xf32>
    %35 = arith.divf %26, %34 : vector<1x10xf32>
    %36 = vector.broadcast %35 : vector<1x10xf32> to vector<2x10xf32>
    %37 = arith.mulf %3, %36 : vector<2x10xf32>
    %cst_19 = arith.constant dense<0.000000e+00> : vector<2x32xf32>
    %38 = tpu.matmul %37, %0, %cst_19 {dimension_numbers = #tpu.dot_dimension_numbers<[1], [0], [0], [1], [0, 0, 1, 1], [], []>} : vector<2x10xf32>, vector<10x32xf32>, vector<2x32xf32> -> vector<2x32xf32>
    %c0_20 = arith.constant 0 : index
    %c0_21 = arith.constant 0 : index
    %39 = vector.load %arg7[%c0_20, %c0_21] : memref<2x32xf32, #tpu.memory_space<vmem>>, vector<2x32xf32>
    tpu.vector_store %arg7[%c0_20, %c0_21], %38 {strides = array<i32>} : memref<2x32xf32, #tpu.memory_space<vmem>>, vector<2x32xf32>,
    return
  }
  func.func @transform_0(%arg0: i32) -> (i32, i32) {
    %c0_i32 = arith.constant 0 : i32
    %c0_i32_0 = arith.constant 0 : i32
    %c0_i32_1 = arith.constant 0 : i32
    return %c0_i32, %c0_i32_0 : i32, i32
  }
  func.func @transform_1(%arg0: i32) -> (i32, i32) {
    %c0_i32 = arith.constant 0 : i32
    %c0_i32_0 = arith.constant 0 : i32
    %c0_i32_1 = arith.constant 0 : i32
    return %c0_i32, %c0_i32_0 : i32, i32
  }
  func.func @transform_2(%arg0: i32) -> (i32, i32) {
    %c0_i32 = arith.constant 0 : i32
    %c0_i32_0 = arith.constant 0 : i32
    %c0_i32_1 = arith.constant 0 : i32
    return %c0_i32, %c0_i32_0 : i32, i32
  }
  func.func @transform_3(%arg0: i32) -> (i32, i32) {
    %c0_i32 = arith.constant 0 : i32
    %c0_i32_0 = arith.constant 0 : i32
    %c0_i32_1 = arith.constant 0 : i32
    return %c0_i32, %c0_i32_0 : i32, i32
  }
  func.func @transform_4(%arg0: i32) -> (i32, i32) {
    %c0_i32 = arith.constant 0 : i32
    %c0_i32_0 = arith.constant 0 : i32
    %c0_i32_1 = arith.constant 0 : i32
    return %c0_i32, %c0_i32_0 : i32, i32
  }
  func.func @transform_5(%arg0: i32) -> (i32, i32) {
    %c0_i32 = arith.constant 0 : i32
    %c0_i32_0 = arith.constant 0 : i32
    %c0_i32_1 = arith.constant 0 : i32
    return %c0_i32, %c0_i32_0 : i32, i32
  }
  func.func @transform_6(%arg0: i32) -> (i32, i32) {
    %c0_i32 = arith.constant 0 : i32
    %c0_i32_0 = arith.constant 0 : i32
    %c0_i32_1 = arith.constant 0 : i32
    return %c0_i32, %c0_i32_0 : i32, i32
  }
}

module attributes {stable_mosaic.version = 11 : i64} {
  func.func @_coattn_rescal_kernel(%arg0: i32, %arg1: memref<2x2x32xf32, #tpu.memory_space<vmem>>, %arg2: memref<2x2x32xf32, #tpu.memory_space<vmem>>, %arg3: memref<2x32x32xf32, #tpu.memory_space<vmem>>, %arg4: memref<32x16xf32, #tpu.memory_space<vmem>>, %arg5: memref<32x16xf32, #tpu.memory_space<vmem>>, %arg6: memref<1x16xf32, #tpu.memory_space<vmem>>, %arg7: memref<1x16xf32, #tpu.memory_space<vmem>>, %arg8: memref<1x2xf32, #tpu.memory_space<vmem>>) attributes {dimension_semantics = [#tpu.dimension_semantics<arbitrary>], iteration_bounds = array<i64: 1>, scalar_prefetch = 0 : i64, scratch_operands = 0 : i64, tpu.core_type = #tpu.core_type<tc>, window_params = [{pipeline_mode = #tpu.pipeline_mode<synchronous>, transform_indices = @transform_0, window_bounds = array<i64: 2, 2, 32>}, {pipeline_mode = #tpu.pipeline_mode<synchronous>, transform_indices = @transform_1, window_bounds = array<i64: 2, 2, 32>}, {pipeline_mode = #tpu.pipeline_mode<synchronous>, transform_indices = @transform_2, window_bounds = array<i64: 2, 32, 32>}, {pipeline_mode = #tpu.pipeline_mode<synchronous>, transform_indices = @transform_3, window_bounds = array<i64: 32, 16>}, {pipeline_mode = #tpu.pipeline_mode<synchronous>, transform_indices = @transform_4, window_bounds = array<i64: 32, 16>}, {pipeline_mode = #tpu.pipeline_mode<synchronous>, transform_indices = @transform_5, window_bounds = array<i64: 1, 16>}, {pipeline_mode = #tpu.pipeline_mode<synchronous>, transform_indices = @transform_6, window_bounds = array<i64: 1, 16>}, {pipeline_mode = #tpu.pipeline_mode<synchronous>, transform_indices = @transform_7, window_bounds = array<i64: 1, 2>}]} {
    %c0 = arith.constant 0 : index
    %c0_0 = arith.constant 0 : index
    %0 = vector.load %arg4[%c0, %c0_0] : memref<32x16xf32, #tpu.memory_space<vmem>>, vector<32x16xf32>
    %c0_1 = arith.constant 0 : index
    %c0_2 = arith.constant 0 : index
    %1 = vector.load %arg5[%c0_1, %c0_2] : memref<32x16xf32, #tpu.memory_space<vmem>>, vector<32x16xf32>
    %c0_3 = arith.constant 0 : index
    %c0_4 = arith.constant 0 : index
    %2 = vector.load %arg6[%c0_3, %c0_4] : memref<1x16xf32, #tpu.memory_space<vmem>>, vector<1x16xf32>
    %c0_5 = arith.constant 0 : index
    %c0_6 = arith.constant 0 : index
    %3 = vector.load %arg7[%c0_5, %c0_6] : memref<1x16xf32, #tpu.memory_space<vmem>>, vector<1x16xf32>
    %4 = tpu.iota {dimensions = array<i32: 1>} : vector<1x2xi32>
    %cst = arith.constant 0.000000e+00 : f32
    %5 = vector.broadcast %cst : f32 to vector<1x2xf32>
    %c0_7 = arith.constant 0 : index
    %c0_8 = arith.constant 0 : index
    %c0_9 = arith.constant 0 : index
    %6 = vector.load %arg1[%c0_7, %c0_8, %c0_9] : memref<2x2x32xf32, #tpu.memory_space<vmem>>, vector<1x2x32xf32>
    %7 = vector.shape_cast %6 : vector<1x2x32xf32> to vector<2x32xf32>
    %c0_10 = arith.constant 0 : index
    %c0_11 = arith.constant 0 : index
    %c0_12 = arith.constant 0 : index
    %8 = vector.load %arg2[%c0_10, %c0_11, %c0_12] : memref<2x2x32xf32, #tpu.memory_space<vmem>>, vector<1x2x32xf32>
    %9 = vector.shape_cast %8 : vector<1x2x32xf32> to vector<2x32xf32>
    %c0_13 = arith.constant 0 : index
    %c0_14 = arith.constant 0 : index
    %c0_15 = arith.constant 0 : index
    %10 = vector.load %arg3[%c0_13, %c0_14, %c0_15] : memref<2x32x32xf32, #tpu.memory_space<vmem>>, vector<1x32x32xf32>
    %11 = vector.shape_cast %10 : vector<1x32x32xf32> to vector<32x32xf32>
    %cst_16 = arith.constant dense<0.000000e+00> : vector<2x16xf32>
    %12 = tpu.matmul %7, %0, %cst_16 {dimension_numbers = #tpu.dot_dimension_numbers<[1], [0], [0], [1], [0, 0, 1, 1], [], []>} : vector<2x32xf32>, vector<32x16xf32>, vector<2x16xf32> -> vector<2x16xf32>
    %cst_17 = arith.constant dense<0.000000e+00> : vector<2x16xf32>
    %13 = tpu.matmul %9, %1, %cst_17 {dimension_numbers = #tpu.dot_dimension_numbers<[1], [0], [0], [1], [0, 0, 1, 1], [], []>} : vector<2x32xf32>, vector<32x16xf32>, vector<2x16xf32> -> vector<2x16xf32>
    %14 = arith.mulf %7, %7 : vector<2x32xf32>
    %cst_18 = arith.constant dense<0.000000e+00> : vector<2xf32>
    %15 = vector.multi_reduction <add>, %14, %cst_18 [1] : vector<2x32xf32> to vector<2xf32>
    %16 = vector.shape_cast %15 : vector<2xf32> to vector<2x1xf32>
    %cst_19 = arith.constant 1.000000e-24 : f32
    %17 = vector.broadcast %cst_19 : f32 to vector<2x1xf32>
    %18 = arith.maximumf %16, %17 : vector<2x1xf32>
    %19 = math.rsqrt %18 : vector<2x1xf32>
    %20 = vector.broadcast %19 : vector<2x1xf32> to vector<2x32xf32>
    %21 = arith.mulf %7, %20 : vector<2x32xf32>
    %22 = arith.mulf %9, %9 : vector<2x32xf32>
    %cst_20 = arith.constant dense<0.000000e+00> : vector<2xf32>
    %23 = vector.multi_reduction <add>, %22, %cst_20 [1] : vector<2x32xf32> to vector<2xf32>
    %24 = vector.shape_cast %23 : vector<2xf32> to vector<2x1xf32>
    %cst_21 = arith.constant 1.000000e-24 : f32
    %25 = vector.broadcast %cst_21 : f32 to vector<2x1xf32>
    %26 = arith.maximumf %24, %25 : vector<2x1xf32>
    %27 = math.rsqrt %26 : vector<2x1xf32>
    %28 = vector.broadcast %27 : vector<2x1xf32> to vector<2x32xf32>
    %29 = arith.mulf %9, %28 : vector<2x32xf32>
    %30 = arith.truncf %21 : vector<2x32xf32> to vector<2x32xbf16>
    %31 = arith.truncf %11 : vector<32x32xf32> to vector<32x32xbf16>
    %cst_22 = arith.constant dense<0.000000e+00> : vector<2x32xf32>
    %32 = tpu.matmul %30, %31, %cst_22 {dimension_numbers = #tpu.dot_dimension_numbers<[1], [0], [0], [1], [0, 0, 1, 1], [], []>} : vector<2x32xbf16>, vector<32x32xbf16>, vector<2x32xf32> -> vector<2x32xf32>
    %33 = arith.truncf %32 : vector<2x32xf32> to vector<2x32xbf16>
    %34 = arith.truncf %29 : vector<2x32xf32> to vector<2x32xbf16>
    %cst_23 = arith.constant dense<0.000000e+00> : vector<2x2xf32>
    %35 = tpu.matmul %33, %34, %cst_23 {dimension_numbers = #tpu.dot_dimension_numbers<[1], [1], [0], [0], [0, 0, 1, 0], [], []>} : vector<2x32xbf16>, vector<2x32xbf16>, vector<2x2xf32> -> vector<2x2xf32>
    %cst_24 = arith.constant 0.000000e+00 : f32
    %36 = vector.broadcast %cst_24 : f32 to vector<1x1xf32>
    %37 = vector.extract_strided_slice %12 {offsets = [0, 0], sizes = [1, 16], strides = [1, 1]} : vector<2x16xf32> to vector<1x16xf32>
    %38 = vector.broadcast %37 : vector<1x16xf32> to vector<2x16xf32>
    %39 = arith.addf %38, %13 : vector<2x16xf32>
    %40 = vector.broadcast %2 : vector<1x16xf32> to vector<2x16xf32>
    %41 = arith.addf %39, %40 : vector<2x16xf32>
    %42 = math.tanh %41 : vector<2x16xf32>
    %cst_25 = arith.constant dense<0.000000e+00> : vector<1x2xf32>
    %43 = tpu.matmul %3, %42, %cst_25 {dimension_numbers = #tpu.dot_dimension_numbers<[1], [1], [0], [0], [0, 0, 1, 0], [], []>} : vector<1x16xf32>, vector<2x16xf32>, vector<1x2xf32> -> vector<1x2xf32>
    %44 = vector.extract_strided_slice %35 {offsets = [0, 0], sizes = [1, 2], strides = [1, 1]} : vector<2x2xf32> to vector<1x2xf32>
    %45 = arith.mulf %43, %44 : vector<1x2xf32>
    %cst_26 = arith.constant dense<0.000000e+00> : vector<1xf32>
    %46 = vector.multi_reduction <add>, %45, %cst_26 [1] : vector<1x2xf32> to vector<1xf32>
    %47 = vector.shape_cast %46 : vector<1xf32> to vector<1x1xf32>
    %48 = arith.addf %36, %47 : vector<1x1xf32>
    %49 = vector.extract_strided_slice %12 {offsets = [1, 0], sizes = [1, 16], strides = [1, 1]} : vector<2x16xf32> to vector<1x16xf32>
    %50 = vector.broadcast %49 : vector<1x16xf32> to vector<2x16xf32>
    %51 = arith.addf %50, %13 : vector<2x16xf32>
    %52 = vector.broadcast %2 : vector<1x16xf32> to vector<2x16xf32>
    %53 = arith.addf %51, %52 : vector<2x16xf32>
    %54 = math.tanh %53 : vector<2x16xf32>
    %cst_27 = arith.constant dense<0.000000e+00> : vector<1x2xf32>
    %55 = tpu.matmul %3, %54, %cst_27 {dimension_numbers = #tpu.dot_dimension_numbers<[1], [1], [0], [0], [0, 0, 1, 0], [], []>} : vector<1x16xf32>, vector<2x16xf32>, vector<1x2xf32> -> vector<1x2xf32>
    %56 = vector.extract_strided_slice %35 {offsets = [1, 0], sizes = [1, 2], strides = [1, 1]} : vector<2x2xf32> to vector<1x2xf32>
    %57 = arith.mulf %55, %56 : vector<1x2xf32>
    %cst_28 = arith.constant dense<0.000000e+00> : vector<1xf32>
    %58 = vector.multi_reduction <add>, %57, %cst_28 [1] : vector<1x2xf32> to vector<1xf32>
    %59 = vector.shape_cast %58 : vector<1xf32> to vector<1x1xf32>
    %60 = arith.addf %48, %59 : vector<1x1xf32>
    %c0_i32 = arith.constant 0 : i32
    %61 = vector.broadcast %c0_i32 : i32 to vector<1x2xi32>
    %62 = arith.cmpi eq, %4, %61 : vector<1x2xi32>
    %cst_29 = arith.constant 0.000000e+00 : f32
    %63 = vector.shape_cast %60 : vector<1x1xf32> to vector<1x1xf32>
    %64 = vector.broadcast %63 : vector<1x1xf32> to vector<1x2xf32>
    %65 = vector.broadcast %cst_29 : f32 to vector<1x2xf32>
    %66 = arith.select %62, %64, %65 : vector<1x2xi1>, vector<1x2xf32>
    %67 = arith.addf %5, %66 : vector<1x2xf32>
    %c1 = arith.constant 1 : index
    %c0_30 = arith.constant 0 : index
    %c0_31 = arith.constant 0 : index
    %68 = vector.load %arg1[%c1, %c0_30, %c0_31] : memref<2x2x32xf32, #tpu.memory_space<vmem>>, vector<1x2x32xf32>
    %69 = vector.shape_cast %68 : vector<1x2x32xf32> to vector<2x32xf32>
    %c1_32 = arith.constant 1 : index
    %c0_33 = arith.constant 0 : index
    %c0_34 = arith.constant 0 : index
    %70 = vector.load %arg2[%c1_32, %c0_33, %c0_34] : memref<2x2x32xf32, #tpu.memory_space<vmem>>, vector<1x2x32xf32>
    %71 = vector.shape_cast %70 : vector<1x2x32xf32> to vector<2x32xf32>
    %c1_35 = arith.constant 1 : index
    %c0_36 = arith.constant 0 : index
    %c0_37 = arith.constant 0 : index
    %72 = vector.load %arg3[%c1_35, %c0_36, %c0_37] : memref<2x32x32xf32, #tpu.memory_space<vmem>>, vector<1x32x32xf32>
    %73 = vector.shape_cast %72 : vector<1x32x32xf32> to vector<32x32xf32>
    %cst_38 = arith.constant dense<0.000000e+00> : vector<2x16xf32>
    %74 = tpu.matmul %69, %0, %cst_38 {dimension_numbers = #tpu.dot_dimension_numbers<[1], [0], [0], [1], [0, 0, 1, 1], [], []>} : vector<2x32xf32>, vector<32x16xf32>, vector<2x16xf32> -> vector<2x16xf32>
    %cst_39 = arith.constant dense<0.000000e+00> : vector<2x16xf32>
    %75 = tpu.matmul %71, %1, %cst_39 {dimension_numbers = #tpu.dot_dimension_numbers<[1], [0], [0], [1], [0, 0, 1, 1], [], []>} : vector<2x32xf32>, vector<32x16xf32>, vector<2x16xf32> -> vector<2x16xf32>
    %76 = arith.mulf %69, %69 : vector<2x32xf32>
    %cst_40 = arith.constant dense<0.000000e+00> : vector<2xf32>
    %77 = vector.multi_reduction <add>, %76, %cst_40 [1] : vector<2x32xf32> to vector<2xf32>
    %78 = vector.shape_cast %77 : vector<2xf32> to vector<2x1xf32>
    %cst_41 = arith.constant 1.000000e-24 : f32
    %79 = vector.broadcast %cst_41 : f32 to vector<2x1xf32>
    %80 = arith.maximumf %78, %79 : vector<2x1xf32>
    %81 = math.rsqrt %80 : vector<2x1xf32>
    %82 = vector.broadcast %81 : vector<2x1xf32> to vector<2x32xf32>
    %83 = arith.mulf %69, %82 : vector<2x32xf32>
    %84 = arith.mulf %71, %71 : vector<2x32xf32>
    %cst_42 = arith.constant dense<0.000000e+00> : vector<2xf32>
    %85 = vector.multi_reduction <add>, %84, %cst_42 [1] : vector<2x32xf32> to vector<2xf32>
    %86 = vector.shape_cast %85 : vector<2xf32> to vector<2x1xf32>
    %cst_43 = arith.constant 1.000000e-24 : f32
    %87 = vector.broadcast %cst_43 : f32 to vector<2x1xf32>
    %88 = arith.maximumf %86, %87 : vector<2x1xf32>
    %89 = math.rsqrt %88 : vector<2x1xf32>
    %90 = vector.broadcast %89 : vector<2x1xf32> to vector<2x32xf32>
    %91 = arith.mulf %71, %90 : vector<2x32xf32>
    %92 = arith.truncf %83 : vector<2x32xf32> to vector<2x32xbf16>
    %93 = arith.truncf %73 : vector<32x32xf32> to vector<32x32xbf16>
    %cst_44 = arith.constant dense<0.000000e+00> : vector<2x32xf32>
    %94 = tpu.matmul %92, %93, %cst_44 {dimension_numbers = #tpu.dot_dimension_numbers<[1], [0], [0], [1], [0, 0, 1, 1], [], []>} : vector<2x32xbf16>, vector<32x32xbf16>, vector<2x32xf32> -> vector<2x32xf32>
    %95 = arith.truncf %94 : vector<2x32xf32> to vector<2x32xbf16>
    %96 = arith.truncf %91 : vector<2x32xf32> to vector<2x32xbf16>
    %cst_45 = arith.constant dense<0.000000e+00> : vector<2x2xf32>
    %97 = tpu.matmul %95, %96, %cst_45 {dimension_numbers = #tpu.dot_dimension_numbers<[1], [1], [0], [0], [0, 0, 1, 0], [], []>} : vector<2x32xbf16>, vector<2x32xbf16>, vector<2x2xf32> -> vector<2x2xf32>
    %cst_46 = arith.constant 0.000000e+00 : f32
    %98 = vector.broadcast %cst_46 : f32 to vector<1x1xf32>
    %99 = vector.extract_strided_slice %74 {offsets = [0, 0], sizes = [1, 16], strides = [1, 1]} : vector<2x16xf32> to vector<1x16xf32>
    %100 = vector.broadcast %99 : vector<1x16xf32> to vector<2x16xf32>
    %101 = arith.addf %100, %75 : vector<2x16xf32>
    %102 = vector.broadcast %2 : vector<1x16xf32> to vector<2x16xf32>
    %103 = arith.addf %101, %102 : vector<2x16xf32>
    %104 = math.tanh %103 : vector<2x16xf32>
    %cst_47 = arith.constant dense<0.000000e+00> : vector<1x2xf32>
    %105 = tpu.matmul %3, %104, %cst_47 {dimension_numbers = #tpu.dot_dimension_numbers<[1], [1], [0], [0], [0, 0, 1, 0], [], []>} : vector<1x16xf32>, vector<2x16xf32>, vector<1x2xf32> -> vector<1x2xf32>
    %106 = vector.extract_strided_slice %97 {offsets = [0, 0], sizes = [1, 2], strides = [1, 1]} : vector<2x2xf32> to vector<1x2xf32>
    %107 = arith.mulf %105, %106 : vector<1x2xf32>
    %cst_48 = arith.constant dense<0.000000e+00> : vector<1xf32>
    %108 = vector.multi_reduction <add>, %107, %cst_48 [1] : vector<1x2xf32> to vector<1xf32>
    %109 = vector.shape_cast %108 : vector<1xf32> to vector<1x1xf32>
    %110 = arith.addf %98, %109 : vector<1x1xf32>
    %111 = vector.extract_strided_slice %74 {offsets = [1, 0], sizes = [1, 16], strides = [1, 1]} : vector<2x16xf32> to vector<1x16xf32>
    %112 = vector.broadcast %111 : vector<1x16xf32> to vector<2x16xf32>
    %113 = arith.addf %112, %75 : vector<2x16xf32>
    %114 = vector.broadcast %2 : vector<1x16xf32> to vector<2x16xf32>
    %115 = arith.addf %113, %114 : vector<2x16xf32>
    %116 = math.tanh %115 : vector<2x16xf32>
    %cst_49 = arith.constant dense<0.000000e+00> : vector<1x2xf32>
    %117 = tpu.matmul %3, %116, %cst_49 {dimension_numbers = #tpu.dot_dimension_numbers<[1], [1], [0], [0], [0, 0, 1, 0], [], []>} : vector<1x16xf32>, vector<2x16xf32>, vector<1x2xf32> -> vector<1x2xf32>
    %118 = vector.extract_strided_slice %97 {offsets = [1, 0], sizes = [1, 2], strides = [1, 1]} : vector<2x2xf32> to vector<1x2xf32>
    %119 = arith.mulf %117, %118 : vector<1x2xf32>
    %cst_50 = arith.constant dense<0.000000e+00> : vector<1xf32>
    %120 = vector.multi_reduction <add>, %119, %cst_50 [1] : vector<1x2xf32> to vector<1xf32>
    %121 = vector.shape_cast %120 : vector<1xf32> to vector<1x1xf32>
    %122 = arith.addf %110, %121 : vector<1x1xf32>
    %c1_i32 = arith.constant 1 : i32
    %123 = vector.broadcast %c1_i32 : i32 to vector<1x2xi32>
    %124 = arith.cmpi eq, %4, %123 : vector<1x2xi32>
    %cst_51 = arith.constant 0.000000e+00 : f32
    %125 = vector.shape_cast %122 : vector<1x1xf32> to vector<1x1xf32>
    %126 = vector.broadcast %125 : vector<1x1xf32> to vector<1x2xf32>
    %127 = vector.broadcast %cst_51 : f32 to vector<1x2xf32>
    %128 = arith.select %124, %126, %127 : vector<1x2xi1>, vector<1x2xf32>
    %129 = arith.addf %67, %128 : vector<1x2xf32>
    %c0_52 = arith.constant 0 : index
    %c0_53 = arith.constant 0 : index
    %130 = vector.load %arg8[%c0_52, %c0_53] : memref<1x2xf32, #tpu.memory_space<vmem>>, vector<1x2xf32>
    tpu.vector_store %arg8[%c0_52, %c0_53], %129 {strides = array<i32>} : memref<1x2xf32, #tpu.memory_space<vmem>>, vector<1x2xf32>,
    return
  }
  func.func @transform_0(%arg0: i32) -> (i32, i32, i32) {
    %c0_i32 = arith.constant 0 : i32
    %c0_i32_0 = arith.constant 0 : i32
    %c0_i32_1 = arith.constant 0 : i32
    %c0_i32_2 = arith.constant 0 : i32
    return %c0_i32, %c0_i32_0, %c0_i32_1 : i32, i32, i32
  }
  func.func @transform_1(%arg0: i32) -> (i32, i32, i32) {
    %c0_i32 = arith.constant 0 : i32
    %c0_i32_0 = arith.constant 0 : i32
    %c0_i32_1 = arith.constant 0 : i32
    %c0_i32_2 = arith.constant 0 : i32
    return %c0_i32, %c0_i32_0, %c0_i32_1 : i32, i32, i32
  }
  func.func @transform_2(%arg0: i32) -> (i32, i32, i32) {
    %c0_i32 = arith.constant 0 : i32
    %c0_i32_0 = arith.constant 0 : i32
    %c0_i32_1 = arith.constant 0 : i32
    %c0_i32_2 = arith.constant 0 : i32
    return %c0_i32, %c0_i32_0, %c0_i32_1 : i32, i32, i32
  }
  func.func @transform_3(%arg0: i32) -> (i32, i32) {
    %c0_i32 = arith.constant 0 : i32
    %c0_i32_0 = arith.constant 0 : i32
    %c0_i32_1 = arith.constant 0 : i32
    return %c0_i32, %c0_i32_0 : i32, i32
  }
  func.func @transform_4(%arg0: i32) -> (i32, i32) {
    %c0_i32 = arith.constant 0 : i32
    %c0_i32_0 = arith.constant 0 : i32
    %c0_i32_1 = arith.constant 0 : i32
    return %c0_i32, %c0_i32_0 : i32, i32
  }
  func.func @transform_5(%arg0: i32) -> (i32, i32) {
    %c0_i32 = arith.constant 0 : i32
    %c0_i32_0 = arith.constant 0 : i32
    %c0_i32_1 = arith.constant 0 : i32
    return %c0_i32, %c0_i32_0 : i32, i32
  }
  func.func @transform_6(%arg0: i32) -> (i32, i32) {
    %c0_i32 = arith.constant 0 : i32
    %c0_i32_0 = arith.constant 0 : i32
    %c0_i32_1 = arith.constant 0 : i32
    return %c0_i32, %c0_i32_0 : i32, i32
  }
  func.func @transform_7(%arg0: i32) -> (i32, i32) {
    %c0_i32 = arith.constant 0 : i32
    %c0_i32_0 = arith.constant 0 : i32
    %c0_i32_1 = arith.constant 0 : i32
    return %c0_i32, %c0_i32_0 : i32, i32
  }
}

</mosaic_0001>

<bundles_post_ra>
// kernel: ssi_ddi_forward.15
= control target key start
LH: loop header
LB: loop body
LE: loop exit
PB: predicated region body
PF: predicated region fallthrough
CT: control target
= control target key end

     0   :  { %vm41_vm0 = vcmask 1043456   ;;  %vm496_vm1 = vmmov 1   ;;  %vm34_vm3 = vcmask 97280   ;;  %vm122_vm4 = vcmask 261120   ;;  %s592_s0 = inlined_call_operand.vmem [shape: f32[12,32], index: 0, kind: input, shape index: {}]   ;;  %s593_s1 = inlined_call_operand.vmem [shape: s8[12,12], index: 1, kind: input, shape index: {}]   ;;  %s594_s3 = inlined_call_operand.vmem [shape: f32[1,32], index: 3, kind: input, shape index: {}]   ;;  %s595_s4 = inlined_call_operand.<no memory space> [shape: f32[1,1], index: 4, kind: input, shape index: {}]   ;;  %s596_s2 = inlined_call_operand.vmem [shape: f32[1,32], index: 2, kind: input, shape index: {}]   ;;  %s597_s5 = inlined_call_operand.vmem [shape: f32[2,12], index: 5, kind: input, shape index: {}]   ;;  %s598_s6 = inlined_call_operand.vmem [shape: f32[2,32], index: 6, kind: output, shape index: {}]  }
   0x1   :  { %v25_v0 = vld [vmem:[%s592_s0] sm:$0xff]  ;;  %v26_v1 = vld [vmem:[%s592_s0 + $0x8] sm:$0xf]  ;;  %vm542_vm2 = vmpackc.low %vm41_vm0, %vm496_vm1  ;;  %v497_v10 = vmov 0.0|0.0   ;;  %vm498_vm6 = vmmov 0   ;;  %v499_v12 = vmov 0.0   ;;  %v11_v15 = vstv %s595_s4 }
   0x2   :  { %v468_v3 = vpack.c.bf16 %v26_v1, %v25_v0  ;;  %v27_v4 = vld [vmem:[%s593_s1] sm:$0x3]  ;;  %v28_v5 = vld [vmem:[%s593_s1 + $0x2] sm:$0x1]  ;;  %474 = vmatprep.subr.bf16.mxu1 %v497_v10  ;;  %vm560_vm5 = vmpackc.low %vm122_vm4, %vm122_vm4  ;;  %451 = vmatprep.mubr.msk.f32.mxu1 %vm498_vm6, %v499_v12  ;;  %v500_v14 = vmov 0   ;;  %v286_v23 = vlaneseq  ;;  %vm298_vm7 = vcmask 91136  }
   0x3   :  { %v29_v6 = vunpack.c.0.s8 %v27_v4  ;;  %v30_v7 = vunpack.c.0.s8 %v28_v5  ;;  %v121_v13 = vld [vmem:[%s594_s3] sm:$0x1]  ;;  %491 = vset.pattern.permute.xlu0 %v500_v14  ;;  %12 = vst [vmem:[#allocation2] sm:$0x1] %v11_v15  ;;  %vm409_vm8 = vcmask 254976  }
   0x4   :  { %470 = vmatprep.subr.msk.bf16.mxu0 %vm542_vm2, %v468_v3  ;;  %477 = vmatpush3.bf16.xpose.msk.msra.mxu1 %vm560_vm5, %v468_v3  ;;  %v120_v20 = vld [vmem:[%s596_s2] sm:$0x1]  ;;  %v287_v24 = vshrl.u32 %v286_v23, 7 }
   0x5   :  { %473 = vmatpush3.bf16.msk.msra.mxu0 %vm542_vm2, %v468_v3  ;;  %v31_v8 = vcvt.s32.f32 %v29_v6  ;;  %v32_v9 = vcvt.s32.f32 %v30_v7  ;;  %482 = vmatprep.subr.bf16.mxu1 %v497_v10  ;;  %v33_v27 = vld [vmem:[%s597_s5] sm:$0x3] }
   0x6   :  { %478 = vmatprep.subr.bf16.mxu0 %v497_v10  ;;  %v288_v25 = vsub.s32 0, %v287_v24  ;;  %v424_v29 = vadd.f32 -1.0, %v33_v27 }
   0x7   :  { %444 = vmatprep.mubr.msk.f32.mxu0 %vm34_vm3, %v31_v8 }
   0x8   :  { %445 = vmatmul.mubr.msk.f32.vlgmr.msra.gmra.mrb[0].mxu0 %vm34_vm3, %v32_v9  ;;  %v292_v34 = vmul.f32 1e+30, %v424_v29 }
   0x9   :  { %458 = vmatprep.mubr.msk.f32.mxu0 %vm498_vm6, %v499_v12 }
   0xa   :  { %v280_v16 = vld [vmem:[#allocation2] sm:$0x1] }
   0xb   :  { %452 = vmatmul.mubr.msk.f32.vlgmr.msra.gmra.mrb[0].mxu1 %vm122_vm4, %v121_v13  ;;  %283 = vperm.xlu0 %491, %v280_v16  }
   0xc   :  { %485 = vmatpush3.bf16.msk.msra.mxu1 %vm542_vm2, %v468_v3  ;;  %465 = vmatprep.mubr.msk.f32.mxu1 %vm498_vm6, %v499_v12 }
  0x8a   :  { %v284_v26 = vpop.permute.xlu0 %283 }
  0x8b   :  { %v289_v28 = vrot.slane %v284_v26, %v288_v25 }
  0xdb   :  { %v446_v17 = vpop.f32.mrb[0].mxu0 }
  0xdc   :  { %v111_v18 = vpop.f32.mrb[1].mxu0 }
  0xdd   :  { %v479_v19 = vpack.c.bf16 %v446_v17, %v111_v18 }
  0xde   :  { %v197_v21 = vpop.f32.mrb[0].mxu1 }
  0xdf   :  { %481 = vmatpush3.bf16.xpose.msk.msra.mxu0 %vm560_vm5, %v479_v19  ;;  %v453_v22 = vpop.f32.mrb[1].mxu1 }
  0xe6   :  { %459 = vmatmul.mubr.msk.f32.vlgmr.msra.gmra.mrb[2].mxu0 %vm122_vm4, %v120_v20 }
 0x1b9   :  { %v276_v30 = vpop.f32.mrb[2].mxu0 }
 0x1ba   :  { %v277_v31 = vadd.f32 %v276_v30, %v197_v21  ;;  %v460_v32 = vpop.f32.mrb[3].mxu0 }
 0x1bc   :  { %v290_v33 = vadd.f32 %v289_v28, %v277_v31 }
 0x1be   :  { %v296_v35 = vrot.slane %v290_v33, %v288_v25 }
 0x1c0   :  { %v297_v36 = vadd.f32 %v296_v35, %v292_v34 }
 0x1c2   :  { %v299_v37 = vsel %vm298_vm7, %v297_v36, -inf }
 0x1c3   :  { %300 = vmax.xlane.f32.xlu0 %v299_v37 }
 0x250   :  { %v301_v38 = vpop.xlane.xlu0 %300 }
 0x251   :  { %v302_v39 = vmul.f32 %v301_v38, %v33_v27 }
 0x253   :  { %v303_v40 = vsel %vm298_vm7, %v302_v39, 0.0 }
 0x254   :  { %v304_v41 = vrot.slane %v303_v40, 4 }
 0x256   :  { %v305_v42 = vadd.f32 %v304_v41, %v303_v40 }
 0x258   :  { %v306_v43 = vrot.slane %v305_v42, 2 }
 0x25a   :  { %v307_v44 = vadd.f32 %v306_v43, %v305_v42 }
 0x25c   :  { %v308_v45 = vrot.slane %v307_v44, 1 }
 0x25e   :  { %v309_v46 = vadd.f32 %v308_v45, %v307_v44 }
 0x260   :  { %v310_v47 = vsub.f32 %v290_v33, %v309_v46 }
 0x262   :  { %v311_v48 = vmul.f32 1.442695, %v310_v47 }
 0x264   :  { %492 = vpow2.f32 %v311_v48 }
 0x26e   :  { %v493_v49 = vpop.eup %492 }
 0x26f   :  { %v316_v50 = vrot.slane %v493_v49, %v288_v25 }
 0x271   :  { %v317_v51 = vmul.f32 %v316_v50, %v33_v27 }
 0x273   :  { %v318_v52 = vsel %vm298_vm7, %v317_v51, 0.0 }
 0x274   :  { %319 = vadd.xlane.f32.xlu1 %v318_v52 }
 0x301   :  { %v320_v53 = vpop.xlane.xlu1 %319 }
 0x302   :  { %v321_v54 = vmul.f32 %v320_v53, %v33_v27 }
 0x304   :  { %v322_v55 = vsel %vm298_vm7, %v321_v54, 0.0 }
 0x305   :  { %v323_v56 = vrot.slane %v322_v55, 4 }
 0x307   :  { %v324_v57 = vadd.f32 %v323_v56, %v322_v55 }
 0x309   :  { %v325_v58 = vrot.slane %v324_v57, 2 }
 0x30b   :  { %v326_v59 = vadd.f32 %v325_v58, %v324_v57 }
 0x30d   :  { %v327_v60 = vrot.slane %v326_v59, 1 }
 0x30f   :  { %v328_v61 = vadd.f32 %v327_v60, %v326_v59 }
 0x311   :  { %494 = vrcp.f32 %v328_v61 }
 0x31b   :  { %v495_v62 = vpop.eup %494 }
 0x31c   :  { %v330_v63 = vmul.f32 %v495_v62, %v493_v49 }
 0x31e   :  { %v334_v0 = vrot.slane %v330_v63, %v288_v25 }
 0x320   :  { %v335_v1 = vmul.f32 %v334_v0, %v33_v27 }
 0x322   :  { %466 = vmatmul.mubr.msk.f32.vlgmr.msra.gmra.mrb[2].mxu1 %vm34_vm3, %v335_v1 }
 0x3f5   :  { %v405_v2 = vpop.f32.mrb[2].mxu1 }
 0x3f6   :  { %410 = vst.msk [vmem:[%s598_s6] sm:$0x3] %vm409_vm8, %v405_v2  ;;  %v467_v3 = vpop.f32.mrb[3].mxu1 }

// kernel: ssi_ddi_forward.9
= control target key start
LH: loop header
LB: loop body
LE: loop exit
PB: predicated region body
PF: predicated region fallthrough
CT: control target
= control target key end

     0   :  { %v597_v0 = vmov 0.0   ;;  %vm598_vm0 = vmmov 0   ;;  %vm47_vm1 = vcmask 261120   ;;  %v599_v10 = vmov 0.0|0.0   ;;  %s720_s1 = inlined_call_operand.vmem [shape: bf16[32,32], index: 1, kind: input, shape index: {}]   ;;  %s721_s3 = inlined_call_operand.vmem [shape: f32[32,2], index: 3, kind: input, shape index: {}]   ;;  %s722_s0 = inlined_call_operand.vmem [shape: bf16[12,32], index: 0, kind: input, shape index: {}]   ;;  %s723_s2 = inlined_call_operand.vmem [shape: f32[2,32], index: 2, kind: input, shape index: {}]   ;;  %s724_s4 = inlined_call_operand.vmem [shape: s8[12,12], index: 4, kind: input, shape index: {}]   ;;  %s725_s5 = inlined_call_operand.vmem [shape: f32[1,32], index: 5, kind: input, shape index: {}]   ;;  %s726_s6 = inlined_call_operand.vmem [shape: f32[12,32], index: 6, kind: output, shape index: {}]  }
   0x1   :  { %519 = vmatprep.subr.bf16.mxu0 %v597_v0  ;;  %v578_v1 = vld [vmem:[%s720_s1] sm:$0xff]   ;;  %523 = vmatprep.mubr.msk.bf16.mxu0 %vm598_vm0, %v597_v0  ;;  %v579_v2 = vld [vmem:[%s720_s1 + $0x8] sm:$0xff]   ;;  %v174_v6 = vld [vmem:[%s721_s3 + $0x10] sm:$0xff]  ;;  %v600_v11 = vmov 0   ;;  %vm328_vm3 = vcmask 1045504   ;;  %v601_v19 = vmov 1   ;;  %v251_v24 = vlaneseq }
   0x2   :  { %531 = vmatprep.mubr.msk.f32.mxu1 %vm598_vm0, %v597_v0  ;;  %520 = vmatpush3.bf16.msra.mxu0 %v578_v1  ;;  %v172_v3 = vld [vmem:[%s721_s3] sm:$0xff]  ;;  %v173_v4 = vld [vmem:[%s721_s3 + $0x8] sm:$0xff]  ;;  %v175_v7 = vld [vmem:[%s721_s3 + $0x18] sm:$0xff]  ;;  %vm294_vm8 = vcmask 97280   ;;  %vm298_vm15 = vcmask 93184  }
   0x3   :  { %521 = vmatprep.subr.bf16.mxu0 %v597_v0  ;;  %v561_v5 = vpack.c.bf16 %v173_v4, %v172_v3  ;;  %v580_v8 = vld [vmem:[%s722_s0] sm:$0x3f]   ;;  %v565_v9 = vpack.c.bf16 %v175_v7, %v174_v6  ;;  %557 = vmatprep.subr.bf16.mxu1 %v599_v10  ;;  %vm559_vm2 = vmpackc.low %vm47_vm1, %vm47_vm1  ;;  %v252_v25 = vshrl.u32 %v251_v24, 7  ;;  %v255_v31 = vand.u32 127, %v251_v24 }
   0x4   :  { %577 = vset.pattern.permute.xlu1 %v600_v11  ;;  %v92_v17 = vld [vmem:[%s723_s2] sm:$0x3]  ;;  %576 = vset.pattern.permute.xlu0 %v601_v19  ;;  %v257_v30 = vld [vmem:[%s724_s4 + $0x2] sm:$0x1] }
   0x5   :  { %v256_v26 = vld [vmem:[%s724_s4] sm:$0x3]  ;;  %v282_v28 = vsub.s32 0, %v252_v25  ;;  %v387_v29 = vsub.s32 1, %v252_v25  ;;  %v259_v33 = vunpack.c.0.s8 %v257_v30  ;;  %vm264_vm5 = vcmp.eq.s32.totalorder %v252_v25, %v255_v31  ;;  %s602_s4 = smov 112  }
   0x6   :  { %522 = vmatpush3.bf16.msra.mxu0 %v579_v2  ;;  %v258_v27 = vunpack.c.0.s8 %v256_v26  ;;  %v253_v41 = vadd.s32 8, %v252_v25 }
   0x7   :  { %562 = vmatprep.subr.bf16.mxu0 %v561_v5  ;;  %v261_v38 = vcvt.s32.f32 %v259_v33 }
   0x8   :  { %v260_v32 = vcvt.s32.f32 %v258_v27  ;;  %vm265_vm10 = vcmp.eq.s32.totalorder %v253_v41, %v255_v31 }
   0x9   :  { %524 = vmatmul.mubr.msk.bf16.vlgmr.msra.gmra.mrb[0].mxu0 %vm47_vm1, %v580_v8  ;;  %vm263_vm9 = vcmp.gt.f32.partialorder %v261_v38, 0.5 }
   0xa   :  { %564 = vmatpush3.bf16.msra.mxu0 %v561_v5  ;;  %vm262_vm4 = vcmp.gt.f32.partialorder %v260_v32, 0.5  ;;  %vm267_vm14 = vmor %vm263_vm9, %vm265_vm10 }
   0xb   :  { %566 = vmatprep.subr.bf16.mxu0 %v565_v9  ;;  %vm684_vm6 = vmor %vm262_vm4, %vm264_vm5 }
   0xe   :  { %568 = vmatpush3.bf16.msra.mxu0 %v565_v9 }
   0xf   :  { %551 = vmatprep.subr.bf16.mxu0 %v597_v0 }
  0xdc   :  { %v85_v12 = vpop.f32.mrb[0].mxu0 }
  0xdd   :  { %v525_v13 = vpop.f32.mrb[1].mxu0  ;;  %542 = vmatprep.mubr.msk.f32.mxu0 %vm47_vm1, %v85_v12 }
  0xde   :  { %v88_v14 = vpop.f32.mrb[2].mxu0 }
  0xdf   :  { %v666_v15 = vpack.c.bf16 %v88_v14, %v85_v12  ;;  %v526_v16 = vpop.f32.mrb[3].mxu0  ;;  %543 = vmatmul.mubr.msk.f32.vlgmr.msra.gmra.mrb[4].mxu0 %vm47_vm1, %v88_v14 }
  0xe0   :  { %553 = vmatprep.mubr.msk.bf16.mxu0 %vm598_vm0, %v597_v0 }
  0xe1   :  { %560 = vmatpush3.bf16.xpose.msk.msra.mxu1 %vm559_vm2, %v666_v15  ;;  %v330_v18 = vsel %vm328_vm3, %v666_v15, 0  ;;  %vm483_vm2 = vcmask 261248  }
  0xe2   :  { %545 = vmatprep.subr.bf16.mxu1 %v597_v0 }
  0xe8   :  { %532 = vmatmul.mubr.msk.f32.vlgmr.msra.gmra.mrb[0].mxu1 %vm47_vm1, %v92_v17  ;;  %vm375_vm1 = vcmask 125952  }
  0xe9   :  { %546 = vmatpush3.bf16.msra.mxu1 %v330_v18  ;;  %547 = vmatprep.mubr.msk.bf16.mxu1 %vm598_vm0, %v597_v0  ;;  %vm373_vm0 = vcmask 130048  }
 0x1b2   :  { %v544_v20 = vpop.f32.mrb[4].mxu0 }
 0x1b3   :  { %277 = vperm.xlu1 %577, %v544_v20   ;;  %v242_v21 = vpop.f32.mrb[5].mxu0 }
 0x1b4   :  { %378 = vperm.xlu0 %576, %v242_v21  }
 0x1b7   :  { %272 = vperm.xlu1 %577, %v242_v21  }
 0x1b8   :  { %382 = vperm.xlu0 %576, %v544_v20   ;;  %v500_v20 = vld [vmem:[%s725_s5] ss:$0 sm:$0xff]  ;;  %s603_s5 = smov 16  }
 0x1bb   :  { %v168_v22 = vpop.f32.mrb[0].mxu1 }
 0x1bc   :  { %v533_v23 = vpop.f32.mrb[1].mxu1  ;;  %v283_v34 = vrot.slane %v168_v22, %v282_v28  ;;  %v388_v35 = vrot.slane %v168_v22, %v387_v29 }
 0x232   :  { %v278_v36 = vpop.permute.xlu1 %277 }
 0x233   :  { %v379_v37 = vpop.permute.xlu0 %378  ;;  %v285_v39 = vadd.f32 %v283_v34, %v278_v36 }
 0x234   :  { %v389_v40 = vadd.f32 %v388_v35, %v379_v37 }
 0x235   :  { %v289_v47 = vmul.f32 0.2, %v285_v39  ;;  %vm287_vm12 = vcmp.gt.f32.partialorder %v285_v39, 0.0 }
 0x236   :  { %v393_v42 = vmul.f32 0.2, %v389_v40  ;;  %v273_v43 = vpop.permute.xlu1 %272  ;;  %vm391_vm7 = vcmp.gt.f32.partialorder %v389_v40, 0.0 }
 0x237   :  { %v284_v45 = vadd.f32 %v283_v34, %v273_v43  ;;  %v383_v46 = vpop.permute.xlu0 %382  ;;  %v291_v57 = vsel %vm287_vm12, %v285_v39, %v289_v47 }
 0x238   :  { %v390_v48 = vadd.f32 %v388_v35, %v383_v46  ;;  %v395_v49 = vsel %vm391_vm7, %v389_v40, %v393_v42  ;;  %v293_v61 = vsel %vm267_vm14, %v291_v57, -1e+30 }
 0x239   :  { %v288_v50 = vmul.f32 0.2, %v284_v45  ;;  %v397_v51 = vsel %vm684_vm6, %v395_v49, -1e+30  ;;  %vm286_vm11 = vcmp.gt.f32.partialorder %v284_v45, 0.0  ;;  %v299_v62 = vsel %vm298_vm15, %v293_v61, -inf }
 0x23a   :  { %v394_v52 = vmul.f32 0.2, %v390_v48  ;;  %v399_v53 = vsel %vm294_vm8, %v397_v51, -inf  ;;  %vm392_vm13 = vcmp.gt.f32.partialorder %v390_v48, 0.0 }
 0x23b   :  { %400 = vmax.xlane.f32.xlu0 %v399_v53  ;;  %v290_v54 = vsel %vm286_vm11, %v284_v45, %v288_v50 }
 0x23c   :  { %v292_v55 = vsel %vm684_vm6, %v290_v54, -1e+30  ;;  %v396_v56 = vsel %vm392_vm13, %v390_v48, %v394_v52 }
 0x23d   :  { %v295_v58 = vsel %vm294_vm8, %v292_v55, -inf  ;;  %v398_v59 = vsel %vm267_vm14, %v396_v56, -1e+30 }
 0x23e   :  { %v402_v60 = vsel %vm298_vm15, %v398_v59, -inf }
 0x23f   :  { %296 = vmax.xlane.f32.xlu0 %v295_v58  ;;  %403 = vmax.xlane.f32.xlu1 %v402_v60 }
 0x243   :  { %300 = vmax.xlane.f32.xlu0 %v299_v62 }
 0x2c8   :  { %v401_v63 = vpop.xlane.xlu0 %400 }
 0x2c9   :  { %v405_v0 = vsub.f32 %v397_v51, %v401_v63 }
 0x2cb   :  { %v407_v1 = vmul.f32 1.442695, %v405_v0 }
 0x2cc   :  { %v404_v2 = vpop.xlane.xlu1 %403  ;;  %v297_v3 = vpop.xlane.xlu0 %296 }
 0x2cd   :  { %581 = vpow2.f32 %v407_v1  ;;  %v406_v4 = vsub.f32 %v398_v59, %v404_v2  ;;  %v302_v5 = vsub.f32 %v292_v55, %v297_v3 }
 0x2cf   :  { %v409_v6 = vmul.f32 1.442695, %v406_v4  ;;  %v304_v7 = vmul.f32 1.442695, %v302_v5 }
 0x2d0   :  { %v301_v8 = vpop.xlane.xlu0 %300 }
 0x2d1   :  { %583 = vpow2.f32 %v409_v6  ;;  %v303_v9 = vsub.f32 %v293_v61, %v301_v8 }
 0x2d2   :  { %585 = vpow2.f32 %v304_v7 }
 0x2d3   :  { %v306_v10 = vmul.f32 1.442695, %v303_v9 }
 0x2d5   :  { %587 = vpow2.f32 %v306_v10 }
 0x2d7   :  { %v582_v11 = vpop.eup %581 }
 0x2d8   :  { %v411_v12 = vsel %vm294_vm8, %v582_v11, 0.0 }
 0x2d9   :  { %412 = vadd.xlane.f32.xlu1 %v411_v12 }
 0x2db   :  { %v584_v13 = vpop.eup %583 }
 0x2dc   :  { %v414_v14 = vsel %vm298_vm15, %v584_v13, 0.0  ;;  %v586_v16 = vpop.eup %585 }
 0x2dd   :  { %415 = vadd.xlane.f32.xlu0 %v414_v14  ;;  %v308_v17 = vsel %vm294_vm8, %v586_v16, 0.0 }
 0x2df   :  { %v588_v18 = vpop.eup %587 }
 0x2e0   :  { %v311_v19 = vsel %vm298_vm15, %v588_v18, 0.0 }
 0x2e1   :  { %309 = vadd.xlane.f32.xlu0 %v308_v17 }
 0x2e5   :  { %312 = vadd.xlane.f32.xlu0 %v311_v19 }
 0x2ea   :  { %423 = vrot.lane.b32.xlu1 %v666_v15, %s602_s4 }
 0x2fb   :  { %425 = vrot.lane.b32.xlu0 %v500_v20, %s602_s4 }
 0x366   :  { %v413_v21 = vpop.xlane.xlu1 %412 }
 0x367   :  { %589 = vrcp.f32 %v413_v21 }
 0x36a   :  { %v424_v22 = vpop.permute.xlu1 %423  ;;  %v416_v23 = vpop.xlane.xlu0 %415 }
 0x36b   :  { %v432_v24 = vsel %vm328_vm3, %v424_v22, 0  ;;  %591 = vrcp.f32 %v416_v23  ;;  %vm485_vm3 = vcmask 257152  }
 0x36c   :  { %552 = vmatpush3.bf16.msra.mxu0 %v432_v24 }
 0x36e   :  { %v310_v25 = vpop.xlane.xlu0 %309 }
 0x36f   :  { %593 = vrcp.f32 %v310_v25 }
 0x371   :  { %v590_v27 = vpop.eup %589 }
 0x372   :  { %v313_v26 = vpop.xlane.xlu0 %312  ;;  %v419_v15 = vmul.f32 %v590_v27, %v582_v11 }
 0x373   :  { %595 = vrcp.f32 %v313_v26 }
 0x375   :  { %v592_v28 = vpop.eup %591 }
 0x376   :  { %v420_v29 = vmul.f32 %v592_v28, %v584_v13  ;;  %v426_v36 = vpop.permute.xlu0 %425 }
 0x378   :  { %v421_v30 = vpack.c.bf16 %v420_v29, %v419_v15 }
 0x379   :  { %v594_v31 = vpop.eup %593 }
 0x37a   :  { %554 = vmatmul.mubr.msk.bf16.vlgmr.msra.gmra.mrb[8].mxu0 %vm294_vm8, %v421_v30  ;;  %v316_v33 = vmul.f32 %v594_v31, %v586_v16 }
 0x37d   :  { %v596_v32 = vpop.eup %595 }
 0x37e   :  { %v317_v34 = vmul.f32 %v596_v32, %v588_v18 }
 0x380   :  { %v318_v35 = vpack.c.bf16 %v317_v34, %v316_v33 }
 0x382   :  { %548 = vmatmul.mubr.msk.bf16.vlgmr.msra.gmra.mrb[4].mxu1 %vm294_vm8, %v318_v35 }
 0x44d   :  { %v468_v37 = vpop.f32.mrb[8].mxu0 }
 0x44e   :  { %v469_v38 = vadd.f32 %v468_v37, %v426_v36  ;;  %v555_v39 = vpop.f32.mrb[9].mxu0 }
 0x44f   :  { %v471_v40 = vpop.f32.mrb[10].mxu0 }
 0x450   :  { %v556_v41 = vpop.f32.mrb[11].mxu0  ;;  %477 = vrot.lane.b32.xlu1 %v469_v38, %s603_s5  ;;  %v472_v42 = vadd.f32 %v471_v40, %v426_v36 }
 0x454   :  { %479 = vrot.lane.b32.xlu1 %v472_v42, %s603_s5 }
 0x455   :  { %v366_v43 = vpop.f32.mrb[4].mxu1 }
 0x456   :  { %v367_v44 = vadd.f32 %v500_v20, %v366_v43  ;;  %v549_v45 = vpop.f32.mrb[5].mxu1 }
 0x457   :  { %v369_v46 = vpop.f32.mrb[6].mxu1 }
 0x458   :  { %374 = vst.msk [vmem:[%s726_s6] sm:$0xff] %vm373_vm0, %v367_v44  ;;  %v370_v47 = vadd.f32 %v500_v20, %v369_v46  ;;  %v550_v48 = vpop.f32.mrb[7].mxu1 }
 0x45a   :  { %376 = vst.msk [vmem:[%s726_s6 + $0x8] sm:$0xf] %vm375_vm1, %v370_v47 }
 0x4c2   :  { %v478_v49 = vpop.permute.xlu1 %477 }
 0x4c3   :  { %484 = vst.msk [vmem:[%s726_s6] sm:$0xff] %vm483_vm2, %v478_v49 }
 0x4c6   :  { %v480_v50 = vpop.permute.xlu1 %479 }
 0x4c7   :  { %486 = vst.msk [vmem:[%s726_s6 + $0x8] sm:$0xf] %vm485_vm3, %v480_v50 }

// kernel: ssi_ddi_forward.10
= control target key start
LH: loop header
LB: loop body
LE: loop exit
PB: predicated region body
PF: predicated region fallthrough
CT: control target
= control target key end

     0   :  { %v597_v0 = vmov 0.0   ;;  %vm598_vm0 = vmmov 0   ;;  %vm47_vm1 = vcmask 261120   ;;  %v599_v10 = vmov 0.0|0.0   ;;  %s720_s1 = inlined_call_operand.vmem [shape: bf16[32,32], index: 1, kind: input, shape index: {}]   ;;  %s721_s3 = inlined_call_operand.vmem [shape: f32[32,2], index: 3, kind: input, shape index: {}]   ;;  %s722_s0 = inlined_call_operand.vmem [shape: bf16[10,32], index: 0, kind: input, shape index: {}]   ;;  %s723_s2 = inlined_call_operand.vmem [shape: f32[2,32], index: 2, kind: input, shape index: {}]   ;;  %s724_s4 = inlined_call_operand.vmem [shape: s8[10,10], index: 4, kind: input, shape index: {}]   ;;  %s725_s5 = inlined_call_operand.vmem [shape: f32[1,32], index: 5, kind: input, shape index: {}]   ;;  %s726_s6 = inlined_call_operand.vmem [shape: f32[10,32], index: 6, kind: output, shape index: {}]  }
   0x1   :  { %519 = vmatprep.subr.bf16.mxu0 %v597_v0  ;;  %v578_v1 = vld [vmem:[%s720_s1] sm:$0xff]   ;;  %523 = vmatprep.mubr.msk.bf16.mxu0 %vm598_vm0, %v597_v0  ;;  %v579_v2 = vld [vmem:[%s720_s1 + $0x8] sm:$0xff]   ;;  %v174_v6 = vld [vmem:[%s721_s3 + $0x10] sm:$0xff]  ;;  %v600_v11 = vmov 0   ;;  %vm328_vm3 = vcmask 1044480   ;;  %v601_v19 = vmov 1   ;;  %v251_v24 = vlaneseq }
   0x2   :  { %531 = vmatprep.mubr.msk.f32.mxu1 %vm598_vm0, %v597_v0  ;;  %520 = vmatpush3.bf16.msra.mxu0 %v578_v1  ;;  %v172_v3 = vld [vmem:[%s721_s3] sm:$0xff]  ;;  %v173_v4 = vld [vmem:[%s721_s3 + $0x8] sm:$0xff]  ;;  %v175_v7 = vld [vmem:[%s721_s3 + $0x18] sm:$0xff]  ;;  %vm294_vm8 = vcmask 80896   ;;  %vm298_vm15 = vcmask 74752  }
   0x3   :  { %521 = vmatprep.subr.bf16.mxu0 %v597_v0  ;;  %v561_v5 = vpack.c.bf16 %v173_v4, %v172_v3  ;;  %v580_v8 = vld [vmem:[%s722_s0] sm:$0x1f]   ;;  %v565_v9 = vpack.c.bf16 %v175_v7, %v174_v6  ;;  %557 = vmatprep.subr.bf16.mxu1 %v599_v10  ;;  %vm559_vm2 = vmpackc.low %vm47_vm1, %vm47_vm1  ;;  %v252_v25 = vshrl.u32 %v251_v24, 7  ;;  %v255_v31 = vand.u32 127, %v251_v24 }
   0x4   :  { %577 = vset.pattern.permute.xlu1 %v600_v11  ;;  %v92_v17 = vld [vmem:[%s723_s2] sm:$0x3]  ;;  %576 = vset.pattern.permute.xlu0 %v601_v19  ;;  %v257_v30 = vld [vmem:[%s724_s4 + $0x2] sm:$0x1] }
   0x5   :  { %v256_v26 = vld [vmem:[%s724_s4] sm:$0x3]  ;;  %v282_v28 = vsub.s32 0, %v252_v25  ;;  %v387_v29 = vsub.s32 1, %v252_v25  ;;  %v259_v33 = vunpack.c.0.s8 %v257_v30  ;;  %vm264_vm5 = vcmp.eq.s32.totalorder %v252_v25, %v255_v31  ;;  %s602_s4 = smov 112  }
   0x6   :  { %522 = vmatpush3.bf16.msra.mxu0 %v579_v2  ;;  %v258_v27 = vunpack.c.0.s8 %v256_v26  ;;  %v253_v41 = vadd.s32 8, %v252_v25 }
   0x7   :  { %562 = vmatprep.subr.bf16.mxu0 %v561_v5  ;;  %v261_v38 = vcvt.s32.f32 %v259_v33 }
   0x8   :  { %v260_v32 = vcvt.s32.f32 %v258_v27  ;;  %vm265_vm10 = vcmp.eq.s32.totalorder %v253_v41, %v255_v31 }
   0x9   :  { %524 = vmatmul.mubr.msk.bf16.vlgmr.msra.gmra.mrb[0].mxu0 %vm47_vm1, %v580_v8  ;;  %vm263_vm9 = vcmp.gt.f32.partialorder %v261_v38, 0.5 }
   0xa   :  { %564 = vmatpush3.bf16.msra.mxu0 %v561_v5  ;;  %vm262_vm4 = vcmp.gt.f32.partialorder %v260_v32, 0.5  ;;  %vm267_vm14 = vmor %vm263_vm9, %vm265_vm10 }
   0xb   :  { %566 = vmatprep.subr.bf16.mxu0 %v565_v9  ;;  %vm684_vm6 = vmor %vm262_vm4, %vm264_vm5 }
   0xe   :  { %568 = vmatpush3.bf16.msra.mxu0 %v565_v9 }
   0xf   :  { %551 = vmatprep.subr.bf16.mxu0 %v597_v0 }
  0xdc   :  { %v85_v12 = vpop.f32.mrb[0].mxu0 }
  0xdd   :  { %v525_v13 = vpop.f32.mrb[1].mxu0  ;;  %542 = vmatprep.mubr.msk.f32.mxu0 %vm47_vm1, %v85_v12 }
  0xde   :  { %v88_v14 = vpop.f32.mrb[2].mxu0 }
  0xdf   :  { %v666_v15 = vpack.c.bf16 %v88_v14, %v85_v12  ;;  %v526_v16 = vpop.f32.mrb[3].mxu0  ;;  %543 = vmatmul.mubr.msk.f32.vlgmr.msra.gmra.mrb[4].mxu0 %vm47_vm1, %v88_v14 }
  0xe0   :  { %553 = vmatprep.mubr.msk.bf16.mxu0 %vm598_vm0, %v597_v0 }
  0xe1   :  { %560 = vmatpush3.bf16.xpose.msk.msra.mxu1 %vm559_vm2, %v666_v15  ;;  %v330_v18 = vsel %vm328_vm3, %v666_v15, 0  ;;  %vm483_vm2 = vcmask 261248  }
  0xe2   :  { %545 = vmatprep.subr.bf16.mxu1 %v597_v0 }
  0xe8   :  { %532 = vmatmul.mubr.msk.f32.vlgmr.msra.gmra.mrb[0].mxu1 %vm47_vm1, %v92_v17  ;;  %vm375_vm1 = vcmask 123904  }
  0xe9   :  { %546 = vmatpush3.bf16.msra.mxu1 %v330_v18  ;;  %547 = vmatprep.mubr.msk.bf16.mxu1 %vm598_vm0, %v597_v0  ;;  %vm373_vm0 = vcmask 130048  }
 0x1b2   :  { %v544_v20 = vpop.f32.mrb[4].mxu0 }
 0x1b3   :  { %277 = vperm.xlu1 %577, %v544_v20   ;;  %v242_v21 = vpop.f32.mrb[5].mxu0 }
 0x1b4   :  { %378 = vperm.xlu0 %576, %v242_v21  }
 0x1b7   :  { %272 = vperm.xlu1 %577, %v242_v21  }
 0x1b8   :  { %382 = vperm.xlu0 %576, %v544_v20   ;;  %v500_v20 = vld [vmem:[%s725_s5] ss:$0 sm:$0xff]  ;;  %s603_s5 = smov 16  }
 0x1bb   :  { %v168_v22 = vpop.f32.mrb[0].mxu1 }
 0x1bc   :  { %v533_v23 = vpop.f32.mrb[1].mxu1  ;;  %v283_v34 = vrot.slane %v168_v22, %v282_v28  ;;  %v388_v35 = vrot.slane %v168_v22, %v387_v29 }
 0x232   :  { %v278_v36 = vpop.permute.xlu1 %277 }
 0x233   :  { %v379_v37 = vpop.permute.xlu0 %378  ;;  %v285_v39 = vadd.f32 %v283_v34, %v278_v36 }
 0x234   :  { %v389_v40 = vadd.f32 %v388_v35, %v379_v37 }
 0x235   :  { %v289_v47 = vmul.f32 0.2, %v285_v39  ;;  %vm287_vm12 = vcmp.gt.f32.partialorder %v285_v39, 0.0 }
 0x236   :  { %v393_v42 = vmul.f32 0.2, %v389_v40  ;;  %v273_v43 = vpop.permute.xlu1 %272  ;;  %vm391_vm7 = vcmp.gt.f32.partialorder %v389_v40, 0.0 }
 0x237   :  { %v284_v45 = vadd.f32 %v283_v34, %v273_v43  ;;  %v383_v46 = vpop.permute.xlu0 %382  ;;  %v291_v57 = vsel %vm287_vm12, %v285_v39, %v289_v47 }
 0x238   :  { %v390_v48 = vadd.f32 %v388_v35, %v383_v46  ;;  %v395_v49 = vsel %vm391_vm7, %v389_v40, %v393_v42  ;;  %v293_v61 = vsel %vm267_vm14, %v291_v57, -1e+30 }
 0x239   :  { %v288_v50 = vmul.f32 0.2, %v284_v45  ;;  %v397_v51 = vsel %vm684_vm6, %v395_v49, -1e+30  ;;  %vm286_vm11 = vcmp.gt.f32.partialorder %v284_v45, 0.0  ;;  %v299_v62 = vsel %vm298_vm15, %v293_v61, -inf }
 0x23a   :  { %v394_v52 = vmul.f32 0.2, %v390_v48  ;;  %v399_v53 = vsel %vm294_vm8, %v397_v51, -inf  ;;  %vm392_vm13 = vcmp.gt.f32.partialorder %v390_v48, 0.0 }
 0x23b   :  { %400 = vmax.xlane.f32.xlu0 %v399_v53  ;;  %v290_v54 = vsel %vm286_vm11, %v284_v45, %v288_v50 }
 0x23c   :  { %v292_v55 = vsel %vm684_vm6, %v290_v54, -1e+30  ;;  %v396_v56 = vsel %vm392_vm13, %v390_v48, %v394_v52 }
 0x23d   :  { %v295_v58 = vsel %vm294_vm8, %v292_v55, -inf  ;;  %v398_v59 = vsel %vm267_vm14, %v396_v56, -1e+30 }
 0x23e   :  { %v402_v60 = vsel %vm298_vm15, %v398_v59, -inf }
 0x23f   :  { %296 = vmax.xlane.f32.xlu0 %v295_v58  ;;  %403 = vmax.xlane.f32.xlu1 %v402_v60 }
 0x243   :  { %300 = vmax.xlane.f32.xlu0 %v299_v62 }
 0x2c8   :  { %v401_v63 = vpop.xlane.xlu0 %400 }
 0x2c9   :  { %v405_v0 = vsub.f32 %v397_v51, %v401_v63 }
 0x2cb   :  { %v407_v1 = vmul.f32 1.442695, %v405_v0 }
 0x2cc   :  { %v404_v2 = vpop.xlane.xlu1 %403  ;;  %v297_v3 = vpop.xlane.xlu0 %296 }
 0x2cd   :  { %581 = vpow2.f32 %v407_v1  ;;  %v406_v4 = vsub.f32 %v398_v59, %v404_v2  ;;  %v302_v5 = vsub.f32 %v292_v55, %v297_v3 }
 0x2cf   :  { %v409_v6 = vmul.f32 1.442695, %v406_v4  ;;  %v304_v7 = vmul.f32 1.442695, %v302_v5 }
 0x2d0   :  { %v301_v8 = vpop.xlane.xlu0 %300 }
 0x2d1   :  { %583 = vpow2.f32 %v409_v6  ;;  %v303_v9 = vsub.f32 %v293_v61, %v301_v8 }
 0x2d2   :  { %585 = vpow2.f32 %v304_v7 }
 0x2d3   :  { %v306_v10 = vmul.f32 1.442695, %v303_v9 }
 0x2d5   :  { %587 = vpow2.f32 %v306_v10 }
 0x2d7   :  { %v582_v11 = vpop.eup %581 }
 0x2d8   :  { %v411_v12 = vsel %vm294_vm8, %v582_v11, 0.0 }
 0x2d9   :  { %412 = vadd.xlane.f32.xlu1 %v411_v12 }
 0x2db   :  { %v584_v13 = vpop.eup %583 }
 0x2dc   :  { %v414_v14 = vsel %vm298_vm15, %v584_v13, 0.0  ;;  %v586_v16 = vpop.eup %585 }
 0x2dd   :  { %415 = vadd.xlane.f32.xlu0 %v414_v14  ;;  %v308_v17 = vsel %vm294_vm8, %v586_v16, 0.0 }
 0x2df   :  { %v588_v18 = vpop.eup %587 }
 0x2e0   :  { %v311_v19 = vsel %vm298_vm15, %v588_v18, 0.0 }
 0x2e1   :  { %309 = vadd.xlane.f32.xlu0 %v308_v17 }
 0x2e5   :  { %312 = vadd.xlane.f32.xlu0 %v311_v19 }
 0x2ea   :  { %423 = vrot.lane.b32.xlu1 %v666_v15, %s602_s4 }
 0x2fb   :  { %425 = vrot.lane.b32.xlu0 %v500_v20, %s602_s4 }
 0x366   :  { %v413_v21 = vpop.xlane.xlu1 %412 }
 0x367   :  { %589 = vrcp.f32 %v413_v21 }
 0x36a   :  { %v424_v22 = vpop.permute.xlu1 %423  ;;  %v416_v23 = vpop.xlane.xlu0 %415 }
 0x36b   :  { %v432_v24 = vsel %vm328_vm3, %v424_v22, 0  ;;  %591 = vrcp.f32 %v416_v23  ;;  %vm485_vm3 = vcmask 255104  }
 0x36c   :  { %552 = vmatpush3.bf16.msra.mxu0 %v432_v24 }
 0x36e   :  { %v310_v25 = vpop.xlane.xlu0 %309 }
 0x36f   :  { %593 = vrcp.f32 %v310_v25 }
 0x371   :  { %v590_v27 = vpop.eup %589 }
 0x372   :  { %v313_v26 = vpop.xlane.xlu0 %312  ;;  %v419_v15 = vmul.f32 %v590_v27, %v582_v11 }
 0x373   :  { %595 = vrcp.f32 %v313_v26 }
 0x375   :  { %v592_v28 = vpop.eup %591 }
 0x376   :  { %v420_v29 = vmul.f32 %v592_v28, %v584_v13  ;;  %v426_v36 = vpop.permute.xlu0 %425 }
 0x378   :  { %v421_v30 = vpack.c.bf16 %v420_v29, %v419_v15 }
 0x379   :  { %v594_v31 = vpop.eup %593 }
 0x37a   :  { %554 = vmatmul.mubr.msk.bf16.vlgmr.msra.gmra.mrb[8].mxu0 %vm294_vm8, %v421_v30  ;;  %v316_v33 = vmul.f32 %v594_v31, %v586_v16 }
 0x37d   :  { %v596_v32 = vpop.eup %595 }
 0x37e   :  { %v317_v34 = vmul.f32 %v596_v32, %v588_v18 }
 0x380   :  { %v318_v35 = vpack.c.bf16 %v317_v34, %v316_v33 }
 0x382   :  { %548 = vmatmul.mubr.msk.bf16.vlgmr.msra.gmra.mrb[4].mxu1 %vm294_vm8, %v318_v35 }
 0x44d   :  { %v468_v37 = vpop.f32.mrb[8].mxu0 }
 0x44e   :  { %v469_v38 = vadd.f32 %v468_v37, %v426_v36  ;;  %v555_v39 = vpop.f32.mrb[9].mxu0 }
 0x44f   :  { %v471_v40 = vpop.f32.mrb[10].mxu0 }
 0x450   :  { %v556_v41 = vpop.f32.mrb[11].mxu0  ;;  %477 = vrot.lane.b32.xlu1 %v469_v38, %s603_s5  ;;  %v472_v42 = vadd.f32 %v471_v40, %v426_v36 }
 0x454   :  { %479 = vrot.lane.b32.xlu1 %v472_v42, %s603_s5 }
 0x455   :  { %v366_v43 = vpop.f32.mrb[4].mxu1 }
 0x456   :  { %v367_v44 = vadd.f32 %v500_v20, %v366_v43  ;;  %v549_v45 = vpop.f32.mrb[5].mxu1 }
 0x457   :  { %v369_v46 = vpop.f32.mrb[6].mxu1 }
 0x458   :  { %374 = vst.msk [vmem:[%s726_s6] sm:$0xff] %vm373_vm0, %v367_v44  ;;  %v370_v47 = vadd.f32 %v500_v20, %v369_v46  ;;  %v550_v48 = vpop.f32.mrb[7].mxu1 }
 0x45a   :  { %376 = vst.msk [vmem:[%s726_s6 + $0x8] sm:$0x3] %vm375_vm1, %v370_v47 }
 0x4c2   :  { %v478_v49 = vpop.permute.xlu1 %477 }
 0x4c3   :  { %484 = vst.msk [vmem:[%s726_s6] sm:$0xff] %vm483_vm2, %v478_v49 }
 0x4c6   :  { %v480_v50 = vpop.permute.xlu1 %479 }
 0x4c7   :  { %486 = vst.msk [vmem:[%s726_s6 + $0x8] sm:$0x3] %vm485_vm3, %v480_v50 }

// kernel: ssi_ddi_forward.16
= control target key start
LH: loop header
LB: loop body
LE: loop exit
PB: predicated region body
PF: predicated region fallthrough
CT: control target
= control target key end

     0   :  { %vm41_vm0 = vcmask 1041408   ;;  %vm496_vm1 = vmmov 1   ;;  %vm34_vm3 = vcmask 80896   ;;  %vm122_vm4 = vcmask 261120   ;;  %s592_s0 = inlined_call_operand.vmem [shape: f32[10,32], index: 0, kind: input, shape index: {}]   ;;  %s593_s1 = inlined_call_operand.vmem [shape: s8[10,10], index: 1, kind: input, shape index: {}]   ;;  %s594_s3 = inlined_call_operand.vmem [shape: f32[1,32], index: 3, kind: input, shape index: {}]   ;;  %s595_s4 = inlined_call_operand.<no memory space> [shape: f32[1,1], index: 4, kind: input, shape index: {}]   ;;  %s596_s2 = inlined_call_operand.vmem [shape: f32[1,32], index: 2, kind: input, shape index: {}]   ;;  %s597_s5 = inlined_call_operand.vmem [shape: f32[2,10], index: 5, kind: input, shape index: {}]   ;;  %s598_s6 = inlined_call_operand.vmem [shape: f32[2,32], index: 6, kind: output, shape index: {}]  }
   0x1   :  { %v25_v0 = vld [vmem:[%s592_s0] sm:$0xff]  ;;  %v26_v1 = vld [vmem:[%s592_s0 + $0x8] sm:$0x3]  ;;  %vm542_vm2 = vmpackc.low %vm41_vm0, %vm496_vm1  ;;  %v497_v10 = vmov 0.0|0.0   ;;  %vm498_vm6 = vmmov 0   ;;  %v499_v12 = vmov 0.0   ;;  %v11_v15 = vstv %s595_s4 }
   0x2   :  { %v468_v3 = vpack.c.bf16 %v26_v1, %v25_v0  ;;  %v27_v4 = vld [vmem:[%s593_s1] sm:$0x3]  ;;  %v28_v5 = vld [vmem:[%s593_s1 + $0x2] sm:$0x1]  ;;  %474 = vmatprep.subr.bf16.mxu1 %v497_v10  ;;  %vm560_vm5 = vmpackc.low %vm122_vm4, %vm122_vm4  ;;  %451 = vmatprep.mubr.msk.f32.mxu1 %vm498_vm6, %v499_v12  ;;  %v500_v14 = vmov 0   ;;  %v286_v23 = vlaneseq  ;;  %vm298_vm7 = vcmask 74752  }
   0x3   :  { %v29_v6 = vunpack.c.0.s8 %v27_v4  ;;  %v30_v7 = vunpack.c.0.s8 %v28_v5  ;;  %v121_v13 = vld [vmem:[%s594_s3] sm:$0x1]  ;;  %491 = vset.pattern.permute.xlu0 %v500_v14  ;;  %12 = vst [vmem:[#allocation2] sm:$0x1] %v11_v15  ;;  %vm409_vm8 = vcmask 254976  }
   0x4   :  { %470 = vmatprep.subr.msk.bf16.mxu0 %vm542_vm2, %v468_v3  ;;  %477 = vmatpush3.bf16.xpose.msk.msra.mxu1 %vm560_vm5, %v468_v3  ;;  %v120_v20 = vld [vmem:[%s596_s2] sm:$0x1]  ;;  %v287_v24 = vshrl.u32 %v286_v23, 7 }
   0x5   :  { %473 = vmatpush3.bf16.msk.msra.mxu0 %vm542_vm2, %v468_v3  ;;  %v31_v8 = vcvt.s32.f32 %v29_v6  ;;  %v32_v9 = vcvt.s32.f32 %v30_v7  ;;  %482 = vmatprep.subr.bf16.mxu1 %v497_v10  ;;  %v33_v27 = vld [vmem:[%s597_s5] sm:$0x3] }
   0x6   :  { %478 = vmatprep.subr.bf16.mxu0 %v497_v10  ;;  %v288_v25 = vsub.s32 0, %v287_v24  ;;  %v424_v29 = vadd.f32 -1.0, %v33_v27 }
   0x7   :  { %444 = vmatprep.mubr.msk.f32.mxu0 %vm34_vm3, %v31_v8 }
   0x8   :  { %445 = vmatmul.mubr.msk.f32.vlgmr.msra.gmra.mrb[0].mxu0 %vm34_vm3, %v32_v9  ;;  %v292_v34 = vmul.f32 1e+30, %v424_v29 }
   0x9   :  { %458 = vmatprep.mubr.msk.f32.mxu0 %vm498_vm6, %v499_v12 }
   0xa   :  { %v280_v16 = vld [vmem:[#allocation2] sm:$0x1] }
   0xb   :  { %452 = vmatmul.mubr.msk.f32.vlgmr.msra.gmra.mrb[0].mxu1 %vm122_vm4, %v121_v13  ;;  %283 = vperm.xlu0 %491, %v280_v16  }
   0xc   :  { %485 = vmatpush3.bf16.msk.msra.mxu1 %vm542_vm2, %v468_v3  ;;  %465 = vmatprep.mubr.msk.f32.mxu1 %vm498_vm6, %v499_v12 }
  0x8a   :  { %v284_v26 = vpop.permute.xlu0 %283 }
  0x8b   :  { %v289_v28 = vrot.slane %v284_v26, %v288_v25 }
  0xdb   :  { %v446_v17 = vpop.f32.mrb[0].mxu0 }
  0xdc   :  { %v111_v18 = vpop.f32.mrb[1].mxu0 }
  0xdd   :  { %v479_v19 = vpack.c.bf16 %v446_v17, %v111_v18 }
  0xde   :  { %v197_v21 = vpop.f32.mrb[0].mxu1 }
  0xdf   :  { %481 = vmatpush3.bf16.xpose.msk.msra.mxu0 %vm560_vm5, %v479_v19  ;;  %v453_v22 = vpop.f32.mrb[1].mxu1 }
  0xe6   :  { %459 = vmatmul.mubr.msk.f32.vlgmr.msra.gmra.mrb[2].mxu0 %vm122_vm4, %v120_v20 }
 0x1b9   :  { %v276_v30 = vpop.f32.mrb[2].mxu0 }
 0x1ba   :  { %v277_v31 = vadd.f32 %v276_v30, %v197_v21  ;;  %v460_v32 = vpop.f32.mrb[3].mxu0 }
 0x1bc   :  { %v290_v33 = vadd.f32 %v289_v28, %v277_v31 }
 0x1be   :  { %v296_v35 = vrot.slane %v290_v33, %v288_v25 }
 0x1c0   :  { %v297_v36 = vadd.f32 %v296_v35, %v292_v34 }
 0x1c2   :  { %v299_v37 = vsel %vm298_vm7, %v297_v36, -inf }
 0x1c3   :  { %300 = vmax.xlane.f32.xlu0 %v299_v37 }
 0x250   :  { %v301_v38 = vpop.xlane.xlu0 %300 }
 0x251   :  { %v302_v39 = vmul.f32 %v301_v38, %v33_v27 }
 0x253   :  { %v303_v40 = vsel %vm298_vm7, %v302_v39, 0.0 }
 0x254   :  { %v304_v41 = vrot.slane %v303_v40, 4 }
 0x256   :  { %v305_v42 = vadd.f32 %v304_v41, %v303_v40 }
 0x258   :  { %v306_v43 = vrot.slane %v305_v42, 2 }
 0x25a   :  { %v307_v44 = vadd.f32 %v306_v43, %v305_v42 }
 0x25c   :  { %v308_v45 = vrot.slane %v307_v44, 1 }
 0x25e   :  { %v309_v46 = vadd.f32 %v308_v45, %v307_v44 }
 0x260   :  { %v310_v47 = vsub.f32 %v290_v33, %v309_v46 }
 0x262   :  { %v311_v48 = vmul.f32 1.442695, %v310_v47 }
 0x264   :  { %492 = vpow2.f32 %v311_v48 }
 0x26e   :  { %v493_v49 = vpop.eup %492 }
 0x26f   :  { %v316_v50 = vrot.slane %v493_v49, %v288_v25 }
 0x271   :  { %v317_v51 = vmul.f32 %v316_v50, %v33_v27 }
 0x273   :  { %v318_v52 = vsel %vm298_vm7, %v317_v51, 0.0 }
 0x274   :  { %319 = vadd.xlane.f32.xlu1 %v318_v52 }
 0x301   :  { %v320_v53 = vpop.xlane.xlu1 %319 }
 0x302   :  { %v321_v54 = vmul.f32 %v320_v53, %v33_v27 }
 0x304   :  { %v322_v55 = vsel %vm298_vm7, %v321_v54, 0.0 }
 0x305   :  { %v323_v56 = vrot.slane %v322_v55, 4 }
 0x307   :  { %v324_v57 = vadd.f32 %v323_v56, %v322_v55 }
 0x309   :  { %v325_v58 = vrot.slane %v324_v57, 2 }
 0x30b   :  { %v326_v59 = vadd.f32 %v325_v58, %v324_v57 }
 0x30d   :  { %v327_v60 = vrot.slane %v326_v59, 1 }
 0x30f   :  { %v328_v61 = vadd.f32 %v327_v60, %v326_v59 }
 0x311   :  { %494 = vrcp.f32 %v328_v61 }
 0x31b   :  { %v495_v62 = vpop.eup %494 }
 0x31c   :  { %v330_v63 = vmul.f32 %v495_v62, %v493_v49 }
 0x31e   :  { %v334_v0 = vrot.slane %v330_v63, %v288_v25 }
 0x320   :  { %v335_v1 = vmul.f32 %v334_v0, %v33_v27 }
 0x322   :  { %466 = vmatmul.mubr.msk.f32.vlgmr.msra.gmra.mrb[2].mxu1 %vm34_vm3, %v335_v1 }
 0x3f5   :  { %v405_v2 = vpop.f32.mrb[2].mxu1 }
 0x3f6   :  { %410 = vst.msk [vmem:[%s598_s6] sm:$0x3] %vm409_vm8, %v405_v2  ;;  %v467_v3 = vpop.f32.mrb[3].mxu1 }

// kernel: ssi_ddi_forward.17
= control target key start
LH: loop header
LB: loop body
LE: loop exit
PB: predicated region body
PF: predicated region fallthrough
CT: control target
= control target key end

     0   :  { %vm194_vm0 = vcmask 254976   ;;  %v1164_v4 = vmov 0.0|0.0   ;;  %vm1165_vm1 = vmmov 0   ;;  %v1166_v11 = vmov 0.0   ;;  %s1397_s0 = inlined_call_operand.vmem [shape: f32[2,2,32], index: 0, kind: input, shape index: {}]   ;;  %s1398_s1 = inlined_call_operand.vmem [shape: f32[2,2,32], index: 1, kind: input, shape index: {}]   ;;  %s1399_s2 = inlined_call_operand.vmem [shape: f32[2,32,32], index: 2, kind: input, shape index: {}]   ;;  %s1400_s3 = inlined_call_operand.vmem [shape: f32[32,16], index: 3, kind: input, shape index: {}]   ;;  %s1401_s4 = inlined_call_operand.vmem [shape: f32[32,16], index: 4, kind: input, shape index: {}]   ;;  %s1402_s5 = inlined_call_operand.vmem [shape: f32[1,16], index: 5, kind: input, shape index: {}]   ;;  %s1403_s6 = inlined_call_operand.vmem [shape: f32[1,16], index: 6, kind: input, shape index: {}]   ;;  %s1404_s7 = inlined_call_operand.hbm [shape: f32[1,2], index: 7, kind: output, shape index: {}]  }
   0x1   :  { %v40_v0 = vld [vmem:[%s1397_s0] sm:$0x3]  ;;  %v29_v2 = vld [vmem:[%s1400_s3 + $0x8] sm:$0xff]  ;;  %1096 = vmatprep.subr.bf16.mxu0 %v1164_v4  ;;  %1102 = vmatprep.subr.bf16.mxu1 %v1164_v4  ;;  %v30_v8 = vld [vmem:[%s1400_s3 + $0x10] sm:$0xff] }
   0x2   :  { %v28_v1 = vld [vmem:[%s1400_s3] sm:$0xff]  ;;  %v193_v3 = vmul.f32 %v40_v0, %v40_v0  ;;  %v33_v7 = vld [vmem:[%s1401_s4 + $0x8] sm:$0xff]  ;;  %v31_v10 = vld [vmem:[%s1400_s3 + $0x18] sm:$0xff]  ;;  %1012 = vmatprep.mubr.msk.f32.mxu0 %vm1165_vm1, %v1166_v11  ;;  %1023 = vmatprep.mubr.msk.f32.mxu1 %vm1165_vm1, %v1166_v11 }
   0x3   :  { %v1218_v5 = vpack.c.bf16 %v29_v2, %v28_v1  ;;  %v32_v6 = vld [vmem:[%s1401_s4] sm:$0xff]  ;;  %v34_v12 = vld [vmem:[%s1401_s4 + $0x10] sm:$0xff]  ;;  %v35_v13 = vld [vmem:[%s1401_s4 + $0x18] sm:$0xff]  ;;  %v1247_v15 = vpack.c.bf16 %v31_v10, %v30_v8 }
   0x4   :  { %v1230_v9 = vpack.c.bf16 %v33_v7, %v32_v6  ;;  %v195_v14 = vsel %vm194_vm0, %v193_v3, 0.0 }
   0x5   :  { %1098 = vmatpush3.bf16.msra.mxu0 %v1218_v5 }
   0x6   :  { %12 = vsyncpa [#allocation3], 0  ;;  %196 = vadd.xlane.f32.xlu0 %v195_v14  ;;  %1104 = vmatpush3.bf16.msra.mxu1 %v1230_v9  ;;  %v1250_v16 = vpack.c.bf16 %v35_v13, %v34_v12  ;;  %vm46_vm2 = vcmask 261120   ;;  %v41_v17 = vld [vmem:[%s1398_s1] sm:$0x3]  ;;  %v43_v19 = vld [vmem:[%s1399_s2 + $0x8] sm:$0xff]  ;;  %v38_v40 = vlaneseq }
   0x7   :  { %1099 = vmatprep.subr.bf16.mxu0 %v1164_v4  ;;  %1105 = vmatprep.subr.bf16.mxu1 %v1164_v4  ;;  %v42_v18 = vld [vmem:[%s1399_s2] sm:$0xff]  ;;  %v44_v21 = vld [vmem:[%s1399_s2 + $0x10] sm:$0xff]  ;;  %v45_v22 = vld [vmem:[%s1399_s2 + $0x18] sm:$0xff]  ;;  %v201_v24 = vmul.f32 %v41_v17, %v41_v17  ;;  %vm315_vm3 = vcmask 130048   ;;  %vm393_vm4 = vcmask 8192  }
   0x8   :  { %v209_v20 = vpack.c.bf16 %v43_v19, %v42_v18  ;;  %v210_v23 = vpack.c.bf16 %v45_v22, %v44_v21  ;;  %v952_v25 = vld [vmem:[%s1397_s0 + $0x2] sm:$0x3]  ;;  %v1292_v41 = vshrl.u32 %v38_v40, 7  ;;  %v1303_v48 = vld [vmem:[%s1402_s5] ss:$0 sm:$0xff]  ;;  %v955_v59 = vld [vmem:[%s1399_s2 + $0x28] sm:$0xff] }
   0x9   :  { %1101 = vmatpush3.bf16.msra.mxu0 %v1247_v15  ;;  %v644_v26 = vmul.f32 %v952_v25, %v952_v25  ;;  %v202_v27 = vsel %vm194_vm0, %v201_v24, 0.0  ;;  %v1311_v55 = vld [vmem:[%s1403_s6] sm:$0x1]  ;;  %v953_v63 = vld [vmem:[%s1398_s1 + $0x2] sm:$0x3]  ;;  %v957_v1 = vld [vmem:[%s1399_s2 + $0x38] sm:$0xff] }
   0xa   :  { %1107 = vmatpush3.bf16.msra.mxu1 %v1250_v16  ;;  %1026 = vmatprep.subr.bf16.mxu0 %v1166_v11  ;;  %v304_v42 = vsub.s32 0, %v1292_v41  ;;  %v400_v43 = vsub.s32 1, %v1292_v41  ;;  %v954_v58 = vld [vmem:[%s1399_s2 + $0x20] sm:$0xff]  ;;  %v651_v3 = vmul.f32 %v953_v63, %v953_v63  ;;  %s1167_s1 = smov [#allocation2]  }
   0xb   :  { %1034 = vmatprep.subr.bf16.mxu1 %v1166_v11  ;;  %203 = vadd.xlane.f32.xlu0 %v202_v27  ;;  %v645_v28 = vsel %vm194_vm0, %v644_v26, 0.0  ;;  %v659_v60 = vpack.c.bf16 %v955_v59, %v954_v58 }
   0xc   :  { %1013 = vmatmul.mubr.msk.f32.vlgmr.msra.gmra.mrb[0].mxu0 %vm46_vm2, %v40_v0  ;;  %646 = vadd.xlane.f32.xlu1 %v645_v28  ;;  %v652_v6 = vsel %vm194_vm0, %v651_v3, 0.0 }
   0xd   :  { %1030 = vmatprep.mubr.msk.bf16.mxu0 %vm1165_vm1, %v1166_v11  ;;  %1024 = vmatmul.mubr.msk.f32.vlgmr.msra.gmra.mrb[0].mxu1 %vm46_vm2, %v41_v17 }
   0xe   :  { %1036 = vmatprep.mubr.msk.bf16.mxu1 %vm1165_vm1, %v1166_v11  ;;  %1027 = vmatpush3.bf16.msra.mxu0 %v209_v20 }
   0xf   :  { %1028 = vmatprep.subr.bf16.mxu0 %v1166_v11 }
  0x10   :  { %653 = vadd.xlane.f32.xlu1 %v652_v6 }
  0x12   :  { %1029 = vmatpush3.bf16.msra.mxu0 %v210_v23 }
  0x13   :  { %1040 = vmatprep.subr.mxu0 %v1166_v11 }
  0x93   :  { %v197_v29 = vpop.xlane.xlu0 %196 }
  0x94   :  { %v198_v30 = vmax.f32 %v197_v29, 1e-24 }
  0x96   :  { %1124 = vrsqrt.f32 %v198_v30 }
  0x98   :  { %v204_v34 = vpop.xlane.xlu0 %203 }
  0x99   :  { %v205_v35 = vmax.f32 %v204_v34, 1e-24  ;;  %v647_v56 = vpop.xlane.xlu1 %646 }
  0x9a   :  { %v648_v57 = vmax.f32 %v647_v56, 1e-24 }
  0x9b   :  { %1126 = vrsqrt.f32 %v205_v35 }
  0xa0   :  { %v1125_v31 = vpop.eup %1124 }
  0xa1   :  { %v200_v32 = vmul.f32 %v1125_v31, %v40_v0  ;;  %v956_v0 = vld [vmem:[%s1399_s2 + $0x30] sm:$0xff]  ;;  %s935_s2 = sshll.u32 %s1167_s1, 4  ;;  %s936_s2 = int_to_ptr.vmem [resolvable:$true] %s935_s2 }
  0xa2   :  { %v660_v2 = vpack.c.bf16 %v957_v1, %v956_v0  ;;  %s1140_s17 = scalar_lea.vmem %s936_s2, 16  ;;  %s1144_s18 = scalar_lea.vmem %s936_s2, 32 }
  0xa3   :  { %v208_v33 = vpack.c.bf16 %v200_v32, %v200_v32  ;;  %p1141_p0 = scmp.ne.s32.totalorder %s936_s2, %s1140_s17  ;;  %p1145_p1 = scmp.lt.s32.totalorder %s936_s2, %s936_s2 }
  0xa4   :  { %p1146_p2 = scmp.lt.s32.totalorder %s1144_s18, %s1140_s17 }
  0xa5   :  { %1031 = vmatmul.mubr.msk.bf16.vlgmr.msra.gmra.mrb[4].mxu0 %vm46_vm2, %v208_v33  ;;  %v1127_v36 = vpop.eup %1126 }
  0xa6   :  { %1042 = vmatprep.mubr.msk.f32.mxu0 %vm1165_vm1, %v1166_v11  ;;  %v207_v37 = vmul.f32 %v1127_v36, %v41_v17  ;;  %v654_v17 = vpop.xlane.xlu1 %653  ;;  %p1147_p3 = por %p1146_p2, %p1145_p1 }
  0xa7   :  { %v655_v18 = vmax.f32 %v654_v17, 1e-24 }
  0xa8   :  { %v255_v38 = vpack.c.bf16 %v207_v37, %v207_v37  ;;  %p1148_p4 = pnand %p1147_p3, %p1141_p0 }
  0xaa   :  { %v260_v39 = vsel %vm46_vm2, %v255_v38, 0 }
  0xab   :  { %1035 = vmatpush3.bf16.xpose.msra.mxu1 %v260_v39 }
  0xac   :  { %1045 = vmatprep.subr.mxu1 %v1166_v11 }
  0xdf   :  { %v116_v44 = vpop.f32.mrb[0].mxu0 }
  0xe0   :  { %v305_v45 = vrot.slane %v116_v44, %v304_v42  ;;  %v401_v46 = vrot.slane %v116_v44, %v400_v43  ;;  %v1014_v47 = vpop.f32.mrb[1].mxu0  ;;  %v189_v49 = vpop.f32.mrb[0].mxu1 }
  0xe1   :  { %v1025_v52 = vpop.f32.mrb[1].mxu1 }
  0xe2   :  { %v306_v50 = vadd.f32 %v305_v45, %v189_v49  ;;  %v402_v51 = vadd.f32 %v401_v46, %v189_v49 }
  0xe4   :  { %v313_v53 = vadd.f32 %v1303_v48, %v306_v50  ;;  %v403_v7 = vadd.f32 %v1303_v48, %v402_v51 }
  0xe6   :  { %1128 = vtanh.f32 %v313_v53 }
  0xe7   :  { %1130 = vrsqrt.f32 %v648_v57 }
  0xe8   :  { %1132 = vtanh.f32 %v403_v7 }
  0xe9   :  { %1134 = vrsqrt.f32 %v655_v18 }
  0xf0   :  { %v1129_v54 = vpop.eup %1128 }
  0xf1   :  { %1041 = vmatpush3.xpose.msk.msra.mxu0 %vm315_vm3, %v1129_v54  ;;  %v1131_v61 = vpop.eup %1130 }
  0xf2   :  { %1108 = vmatprep.subr.bf16.mxu0 %v1164_v4  ;;  %v650_v62 = vmul.f32 %v1131_v61, %v952_v25  ;;  %v1133_v10 = vpop.eup %1132 }
  0xf4   :  { %1043 = vmatmul.mubr.msk.f32.vlgmr.msra.gmra.mrb[2].mxu0 %vm315_vm3, %v1311_v55 }
  0xf5   :  { %1110 = vmatpush3.bf16.msra.mxu0 %v1218_v5  ;;  %1058 = vmatprep.mubr.msk.f32.mxu0 %vm1165_vm1, %v1166_v11  ;;  %v658_v5 = vpack.c.bf16 %v650_v62, %v650_v62 }
  0xf6   :  { %1111 = vmatprep.subr.bf16.mxu0 %v1164_v4 }
  0xf9   :  { %1113 = vmatpush3.bf16.msra.mxu0 %v1247_v15 }
  0xfa   :  { %1072 = vmatprep.subr.bf16.mxu0 %v1166_v11 }
  0xfc   :  { %1059 = vmatmul.mubr.msk.f32.vlgmr.msra.gmra.mrb[8].mxu0 %vm46_vm2, %v952_v25 }
  0xfd   :  { %1076 = vmatprep.mubr.msk.bf16.mxu0 %vm1165_vm1, %v1166_v11  ;;  %1073 = vmatpush3.bf16.msra.mxu0 %v659_v60 }
  0xfe   :  { %1074 = vmatprep.subr.bf16.mxu0 %v1166_v11 }
 0x101   :  { %1075 = vmatpush3.bf16.msra.mxu0 %v660_v2 }
 0x102   :  { %1086 = vmatprep.subr.mxu0 %v1166_v11 }
 0x104   :  { %1077 = vmatmul.mubr.msk.bf16.vlgmr.msra.gmra.mrb[12].mxu0 %vm46_vm2, %v658_v5 }
 0x105   :  { %1088 = vmatprep.mubr.msk.f32.mxu0 %vm1165_vm1, %v1166_v11 }
 0x178   :  { %v248_v8 = vpop.f32.mrb[4].mxu0 }
 0x179   :  { %v254_v12 = vpack.c.bf16 %v248_v8, %v248_v8  ;;  %v1032_v13 = vpop.f32.mrb[5].mxu0 }
 0x17a   :  { %v251_v14 = vpop.f32.mrb[6].mxu0 }
 0x17b   :  { %v1033_v15 = vpop.f32.mrb[7].mxu0  ;;  %1037 = vmatmul.mubr.msk.bf16.vlgmr.msra.gmra.mrb[4].mxu1 %vm46_vm2, %v254_v12 }
 0x17c   :  { %1046 = vmatpush3.xpose.msk.msra.mxu1 %vm315_vm3, %v1133_v10  ;;  %1047 = vmatprep.mubr.msk.f32.mxu1 %vm1165_vm1, %v1166_v11 }
 0x17d   :  { %1114 = vmatprep.subr.bf16.mxu1 %v1164_v4 }
 0x183   :  { %1048 = vmatmul.mubr.msk.f32.vlgmr.msra.gmra.mrb[2].mxu1 %vm315_vm3, %v1311_v55 }
 0x184   :  { %1116 = vmatpush3.bf16.msra.mxu1 %v1230_v9  ;;  %1069 = vmatprep.mubr.msk.f32.mxu1 %vm1165_vm1, %v1166_v11  ;;  %v1135_v9 = vpop.eup %1134 }
 0x185   :  { %1117 = vmatprep.subr.bf16.mxu1 %v1164_v4  ;;  %v657_v23 = vmul.f32 %v1135_v9, %v953_v63 }
 0x187   :  { %v705_v24 = vpack.c.bf16 %v657_v23, %v657_v23 }
 0x188   :  { %1119 = vmatpush3.bf16.msra.mxu1 %v1250_v16 }
 0x189   :  { %1080 = vmatprep.subr.bf16.mxu1 %v1166_v11  ;;  %v710_v4 = vsel %vm46_vm2, %v705_v24, 0 }
 0x18b   :  { %1070 = vmatmul.mubr.msk.f32.vlgmr.msra.gmra.mrb[8].mxu1 %vm46_vm2, %v953_v63 }
 0x18c   :  { %1082 = vmatprep.mubr.msk.bf16.mxu1 %vm1165_vm1, %v1166_v11 }
 0x191   :  { %1081 = vmatpush3.bf16.xpose.msra.mxu1 %v710_v4 }
 0x192   :  { %1091 = vmatprep.subr.mxu1 %v1166_v11 }
 0x1c7   :  { %v388_v19 = vpop.f32.mrb[2].mxu0 }
 0x1c8   :  { %v1044_v20 = vpop.f32.mrb[3].mxu0 }
 0x1cf   :  { %v567_v21 = vpop.f32.mrb[8].mxu0 }
 0x1d0   :  { %v1060_v22 = vpop.f32.mrb[9].mxu0  ;;  %v755_v44 = vrot.slane %v567_v21, %v304_v42 }
 0x1d7   :  { %v698_v16 = vpop.f32.mrb[12].mxu0 }
 0x1d8   :  { %v704_v25 = vpack.c.bf16 %v698_v16, %v698_v16  ;;  %v1078_v26 = vpop.f32.mrb[13].mxu0 }
 0x1d9   :  { %v701_v27 = vpop.f32.mrb[14].mxu0 }
 0x1da   :  { %1083 = vmatmul.mubr.msk.bf16.vlgmr.msra.gmra.mrb[12].mxu1 %vm46_vm2, %v704_v25  ;;  %v1079_v28 = vpop.f32.mrb[15].mxu0 }
 0x1db   :  { %1093 = vmatprep.mubr.msk.f32.mxu1 %vm1165_vm1, %v1166_v11  ;;  %v840_v11 = vrot.slane %v567_v21, %v400_v43 }
 0x24e   :  { %v296_v29 = vpop.f32.mrb[4].mxu1 }
 0x24f   :  { %v392_v30 = vmul.f32 %v388_v19, %v296_v29  ;;  %v1038_v31 = vpop.f32.mrb[5].mxu1  ;;  %v479_v35 = vrot.slane %v296_v29, 1 }
 0x250   :  { %v299_v32 = vpop.f32.mrb[6].mxu1 }
 0x251   :  { %v1039_v33 = vpop.f32.mrb[7].mxu1  ;;  %v394_v34 = vsel %vm393_vm4, %v392_v30, 0.0 }
 0x252   :  { %395 = vadd.xlane.f32.xlu0 %v394_v34 }
 0x256   :  { %v474_v36 = vpop.f32.mrb[2].mxu1 }
 0x257   :  { %v481_v37 = vmul.f32 %v479_v35, %v474_v36  ;;  %v1049_v38 = vpop.f32.mrb[3].mxu1 }
 0x259   :  { %v482_v39 = vsel %vm393_vm4, %v481_v37, 0.0 }
 0x25a   :  { %483 = vadd.xlane.f32.xlu1 %v482_v39 }
 0x25e   :  { %v640_v45 = vpop.f32.mrb[8].mxu1 }
 0x25f   :  { %v756_v46 = vadd.f32 %v755_v44, %v640_v45  ;;  %v841_v47 = vadd.f32 %v840_v11, %v640_v45  ;;  %v1071_v49 = vpop.f32.mrb[9].mxu1 }
 0x261   :  { %v757_v50 = vadd.f32 %v1303_v48, %v756_v46  ;;  %v842_v51 = vadd.f32 %v1303_v48, %v841_v47 }
 0x263   :  { %1136 = vtanh.f32 %v757_v50 }
 0x264   :  { %1138 = vtanh.f32 %v842_v51 }
 0x26d   :  { %v1137_v52 = vpop.eup %1136 }
 0x26e   :  { %v1139_v53 = vpop.eup %1138  ;;  %1087 = vmatpush3.xpose.msk.msra.mxu0 %vm315_vm3, %v1137_v52 }
 0x26f   :  { %1092 = vmatpush3.xpose.msk.msra.mxu1 %vm315_vm3, %v1139_v53 }
 0x271   :  { %1089 = vmatmul.mubr.msk.f32.vlgmr.msra.gmra.mrb[10].mxu0 %vm315_vm3, %v1311_v55 }
 0x272   :  { %1094 = vmatmul.mubr.msk.f32.vlgmr.msra.gmra.mrb[10].mxu1 %vm315_vm3, %v1311_v55  ;;  %v39_v55 = vand.u32 127, %v38_v40 }
 0x274   :  { %vm486_vm5 = vcmp.eq.s32.totalorder %v39_v55, 0  ;;  %vm925_vm6 = vcmp.eq.s32.totalorder %v39_v55, 1 }
 0x2ad   :  { %v746_v41 = vpop.f32.mrb[12].mxu1 }
 0x2ae   :  { %v1084_v42 = vpop.f32.mrb[13].mxu1  ;;  %v918_v56 = vrot.slane %v746_v41, 1 }
 0x2af   :  { %v749_v43 = vpop.f32.mrb[14].mxu1 }
 0x2b0   :  { %v1085_v54 = vpop.f32.mrb[15].mxu1 }
 0x2df   :  { %v396_v0 = vpop.xlane.xlu0 %395 }
 0x2e7   :  { %v484_v1 = vpop.xlane.xlu1 %483 }
 0x2e8   :  { %v485_v2 = vadd.f32 %v484_v1, %v396_v0 }
 0x2ea   :  { %v487_v7 = vsel %vm486_vm5, %v485_v2, 0.0 }
 0x344   :  { %v828_v48 = vpop.f32.mrb[10].mxu0 }
 0x345   :  { %v832_v57 = vmul.f32 %v828_v48, %v746_v41  ;;  %v913_v58 = vpop.f32.mrb[10].mxu1  ;;  %v1090_v59 = vpop.f32.mrb[11].mxu0 }
 0x346   :  { %v920_v60 = vmul.f32 %v918_v56, %v913_v58  ;;  %v1095_v61 = vpop.f32.mrb[11].mxu1 }
 0x347   :  { %v833_v62 = vsel %vm393_vm4, %v832_v57, 0.0 }
 0x348   :  { %v921_v63 = vsel %vm393_vm4, %v920_v60, 0.0  ;;  %834 = vadd.xlane.f32.xlu0 %v833_v62 }
 0x349   :  { %922 = vadd.xlane.f32.xlu1 %v921_v63 }
 0x3d5   :  { %v835_v3 = vpop.xlane.xlu0 %834 }
 0x3d6   :  { %v923_v5 = vpop.xlane.xlu1 %922 }
 0x3d7   :  { %v924_v6 = vadd.f32 %v923_v5, %v835_v3 }
 0x3d9   :  { %v926_v8 = vsel %vm925_vm6, %v924_v6, 0.0 }
 0x3da   :  { %v927_v10 = vadd.f32 %v926_v8, %v487_v7 }
 0x3dc   :  { %928 = vst.msk [vmem:[#allocation2] sm:$0x1] %vm393_vm4, %v927_v10 }
 0x3dd   :  { %1151 = shalt.err (!%p1148_p4)
}
 0x3de   :  { %s1152_s19 = scalar_lea.hbm %s1404_s7, 16 }
 0x3df   :  { %p1153_p5 = scmp.ne.s32.totalorder %s1404_s7, %s1152_s19  ;;  %p1156_p6 = scmp.lt.u32.totalorder %s1152_s19, %s1404_s7 }
 0x3e1   :  { %p1158_p7 = pnand %p1156_p6, %p1153_p5 }
 0x3e3   :  { %1161 = shalt.err (!%p1158_p7)
}
 0x3e4   :  { %938 = dma.vmem_to_hbm [thread:$0]  %s936_s2, 16, %s1404_s7, [#allocation3]  }
 0x3e5   :  { %1162 = dma.done.wait [#allocation3], 16  }
 0x3e6   :  { %1163 = vsyncadd [#allocation3], 4294967280 }
 0x3e7   :  { %942 = vsyncpa [#allocation3], 1 }

</bundles_post_ra>
